<compile_context>
chip_gen: v7x
topology: tpu7x:2x2x1
jax: 0.10.0
libtpu: 0.0.40
codegen_flags: <defaults>
</compile_context>

<pallas_src>
import functools

import jax
import jax.numpy as jnp
from jax import lax
from jax.experimental import pallas as pl
from jax.experimental.pallas import tpu as pltpu


def _basic_block_kernel(x_ref, r1_ref, s1_ref, b1_ref, r2_ref, s2_ref, b2_ref,
                        out_ref, pad_ref, *, Bt, H, WC):
    """One grid step = Bt images of BasicBlock (stride=1, downsample=None).

    x_ref  : (Bt*H, W*C)      f32 lane-dense stacked input rows
    r1_ref : (3*W*C, W*C)     bf16 conv1 lowered (block-banded) weights
    s1_ref : (1, W*C)         f32 folded BN1 scale, tiled across W
    b1_ref : (1, W*C)         f32 folded BN1 bias
    r2_ref : (3*W*C, W*C)     bf16 conv2 lowered weights
    s2_ref : (1, W*C)         f32 folded BN2 scale
    b2_ref : (1, W*C)         f32 folded BN2 bias
    out_ref: (Bt*H, W*C)      f32 lane-dense stacked output rows
    pad_ref: (Bt*H + 2, W*C)  f32 persistent VMEM scratch (rows 1..M hold the
                              current activation; rows 0 / M+1 are don't-care)
    """
    M = Bt * H

    # Per-row masks for the +/-1-row conv taps: zero the "row above" operand at
    # each image's first row and the "row below" operand at each image's last
    # row.  This covers both the conv zero-padding at the image edges and the
    # cross-image seams introduced by stacking Bt images into the M dimension.
    local = lax.broadcasted_iota(jnp.int32, (Bt, H, WC), 1).reshape(M, WC)
    top = local == 0
    bot = local == H - 1

    # Scratch halo rows 0 and M+1 are never written by the per-step interior
    # store and are masked out of every read (see `top`/`bot`), so correctness
    # does not depend on their contents — zero them once purely for hygiene.
    # (Safe under megacore "parallel" sharding for the same reason.)
    @pl.when(pl.program_id(0) == 0)
    def _init_halo():
        pad_ref[0:1, :] = jnp.zeros((1, WC), dtype=jnp.float32)
        pad_ref[M + 1:M + 2, :] = jnp.zeros((1, WC), dtype=jnp.float32)

    def conv3x3(r_ref):
        # Three MXU matmuls (one per kernel row), K = N = W*C, f32 accumulate.
        # Width-direction taps/padding are baked into the block-banded weights;
        # height-direction taps are sublane-shifted views of the scratch.
        up = jnp.where(top, 0.0, pad_ref[0:M, :]).astype(jnp.bfloat16)
        ce = pad_ref[1:M + 1, :].astype(jnp.bfloat16)
        dn = jnp.where(bot, 0.0, pad_ref[2:M + 2, :]).astype(jnp.bfloat16)
        acc = jnp.dot(up, r_ref[0:WC, :], preferred_element_type=jnp.float32)
        acc = acc + jnp.dot(ce, r_ref[WC:2 * WC, :],
                            preferred_element_type=jnp.float32)
        acc = acc + jnp.dot(dn, r_ref[2 * WC:3 * WC, :],
                            preferred_element_type=jnp.float32)
        return acc

    # ---- conv1 -> bn1 -> relu ----
    pad_ref[1:M + 1, :] = x_ref[...]
    y1 = conv3x3(r1_ref)
    y1 = jnp.maximum(y1 * s1_ref[...] + b1_ref[...], 0.0)

    # ---- conv2 -> bn2 -> +residual -> relu ----  (residual stays f32)
    pad_ref[1:M + 1, :] = y1
    y2 = conv3x3(r2_ref)
    y2 = y2 * s2_ref[...] + b2_ref[...] + x_ref[...]
    out_ref[...] = jnp.maximum(y2, 0.0).astype(out_ref.dtype)


def _lower_conv3x3_weights(w_hwio, W):
    """(3, 3, Cin, Cout) conv weights -> (3*W*Cin, W*Cout) block-banded matrix.

    Row index = ky*(W*Cin) + xin*Cin + ci   (ky: kernel row 0..2)
    Col index =               xout*Cout + co
    Entry     = w[ky, xin - xout + 1, ci, co] when |xin - xout| <= 1, else 0,
    which bakes the width-direction zero padding into the weights.
    TODO(synk): O((W*C)^2) memory — switch to a W-tiled lowering for real
    ResNet widths (see module-level TODO).
    """
    kh, kw, cin, cout = w_hwio.shape
    assert (kh, kw) == (3, 3)
    r5 = jnp.zeros((3, W, cin, W, cout), dtype=w_hwio.dtype)
    for dx in range(3):                 # column offset = dx - 1
        for xout in range(W):
            xin = xout + dx - 1
            if 0 <= xin < W:
                r5 = r5.at[:, xin, :, xout, :].set(w_hwio[:, dx, :, :])
    return r5.reshape(3 * W * cin, W * cout)


def _pick_batch_tile(N, H, target_m=256):
    """Images per grid step: fill the MXU M dimension but keep >=2 grid points
    where possible so both v7x TensorCores get work."""
    divisors = [d for d in range(1, N + 1) if N % d == 0]
    ok = [d for d in divisors if (d * H) % 8 == 0 and d * H <= target_m]
    if not ok:
        return N                      # full-array block is always legal
    bt = max(ok)
    if N // bt < 2:
        smaller = [d for d in ok if N // d >= 2]
        if smaller:
            bt = max(smaller)
    return bt


def basic_block_pallas(x_nhwc, w1_hwio, s1, b1, w2_hwio, s2, b2):
    """x_nhwc: (N, H, W, C) f32.  Conv weights in HWIO, BN folded to scale/bias."""
    N, H, W, C = x_nhwc.shape
    assert w1_hwio.shape == (3, 3, C, C) and w2_hwio.shape == (3, 3, C, C), (
        "stride=1 / downsample=None requires inplanes == planes")
    WC = W * C
    assert WC % 128 == 0, (
        f"lane-dense layout requires W*C to be a multiple of 128, got {WC}")

    Bt = _pick_batch_tile(N, H)
    M = Bt * H
    assert N % Bt == 0
    assert (M % 8 == 0) or (M == N * H), "block sublane dim must be 8-aligned"

    # One-off host-side precompute: lowered bf16 weights + lane-tiled f32 BN.
    r1 = _lower_conv3x3_weights(w1_hwio, W).astype(jnp.bfloat16)
    r2 = _lower_conv3x3_weights(w2_hwio, W).astype(jnp.bfloat16)
    s1t = jnp.tile(s1.reshape(1, C), (1, W)).astype(jnp.float32)
    b1t = jnp.tile(b1.reshape(1, C), (1, W)).astype(jnp.float32)
    s2t = jnp.tile(s2.reshape(1, C), (1, W)).astype(jnp.float32)
    b2t = jnp.tile(b2.reshape(1, C), (1, W)).astype(jnp.float32)

    x2d = x_nhwc.reshape(N * H, WC)                   # lane-dense view (free)

    kernel = functools.partial(_basic_block_kernel, Bt=Bt, H=H, WC=WC)

    grid_spec = pltpu.PrefetchScalarGridSpec(
        num_scalar_prefetch=0,
        grid=(N // Bt,),
        in_specs=[
            pl.BlockSpec((M, WC), lambda n: (n, 0)),          # x rows
            pl.BlockSpec((3 * WC, WC), lambda n: (0, 0)),      # r1
            pl.BlockSpec((1, WC), lambda n: (0, 0)),           # s1
            pl.BlockSpec((1, WC), lambda n: (0, 0)),           # b1
            pl.BlockSpec((3 * WC, WC), lambda n: (0, 0)),      # r2
            pl.BlockSpec((1, WC), lambda n: (0, 0)),           # s2
            pl.BlockSpec((1, WC), lambda n: (0, 0)),           # b2
        ],
        out_specs=pl.BlockSpec((M, WC), lambda n: (n, 0)),
        scratch_shapes=[pltpu.VMEM((M + 2, WC), jnp.float32)],
    )

    out2d = pl.pallas_call(
        kernel,
        out_shape=jax.ShapeDtypeStruct((N * H, WC), jnp.float32),
        grid_spec=grid_spec,
        compiler_params=pltpu.CompilerParams(
            dimension_semantics=("parallel",)),
    )(x2d, r1, s1t, b1t, r2, s2t, b2t)
    return out2d.reshape(N, H, W, C)


# ---------------------------------------------------------------------------
# Reference (pure JAX / XLA, f32 HIGHEST) implementation for verification
# ---------------------------------------------------------------------------
def _conv3x3_ref(x_nhwc, w_hwio):
    return lax.conv_general_dilated(
        x_nhwc, w_hwio, window_strides=(1, 1), padding=((1, 1), (1, 1)),
        dimension_numbers=("NHWC", "HWIO", "NHWC"),
        precision=lax.Precision.HIGHEST)


def basic_block_ref(x_nhwc, w1_hwio, s1, b1, w2_hwio, s2, b2):
    out = _conv3x3_ref(x_nhwc, w1_hwio)
    out = out * s1 + b1
    out = jnp.maximum(out, 0.0)
    out = _conv3x3_ref(out, w2_hwio)
    out = out * s2 + b2
    out = out + x_nhwc
    return jnp.maximum(out, 0.0)


if __name__ == "__main__":
    key = jax.random.PRNGKey(0)
    # N=16 so Bt=8 images stack into M=128 per grid step and the grid keeps
    # 2 program points (one per v7x TensorCore).
    N, C, H, W = 16, 8, 16, 16       # inplanes == planes == 8, stride=1, W*C=128
    eps = 1e-5

    ks = jax.random.split(key, 11)

    # Input (PyTorch-style NCHW), then move to NHWC for the kernel.
    x_nchw = jax.random.normal(ks[0], (N, C, H, W), dtype=jnp.float32)
    x_nhwc = jnp.transpose(x_nchw, (0, 2, 3, 1))

    # conv weights (PyTorch layout OIHW) -> HWIO
    w1_oihw = 0.1 * jax.random.normal(ks[1], (C, C, 3, 3), dtype=jnp.float32)
    w2_oihw = 0.1 * jax.random.normal(ks[2], (C, C, 3, 3), dtype=jnp.float32)
    w1_hwio = jnp.transpose(w1_oihw, (2, 3, 1, 0))
    w2_hwio = jnp.transpose(w2_oihw, (2, 3, 1, 0))

    # BatchNorm params (eval-mode / running-stats semantics)
    gamma1 = 1.0 + 0.1 * jax.random.normal(ks[3], (C,), dtype=jnp.float32)
    beta1 = 0.1 * jax.random.normal(ks[4], (C,), dtype=jnp.float32)
    mean1 = 0.1 * jax.random.normal(ks[5], (C,), dtype=jnp.float32)
    var1 = jax.random.uniform(ks[6], (C,), minval=0.5, maxval=1.5)
    gamma2 = 1.0 + 0.1 * jax.random.normal(ks[7], (C,), dtype=jnp.float32)
    beta2 = 0.1 * jax.random.normal(ks[8], (C,), dtype=jnp.float32)
    mean2 = 0.1 * jax.random.normal(ks[9], (C,), dtype=jnp.float32)
    var2 = jax.random.uniform(ks[10], (C,), minval=0.5, maxval=1.5)

    # Fold BN into per-channel scale / bias
    s1 = gamma1 / jnp.sqrt(var1 + eps)
    b1 = beta1 - mean1 * s1
    s2 = gamma2 / jnp.sqrt(var2 + eps)
    b2 = beta2 - mean2 * s2

    out = basic_block_pallas(x_nhwc, w1_hwio, s1, b1, w2_hwio, s2, b2)
    out = jax.block_until_ready(out)

    ref = basic_block_ref(x_nhwc, w1_hwio, s1, b1, w2_hwio, s2, b2)
    ref = jax.block_until_ready(ref)

    assert out.shape == (N, H, W, C)
    # Tolerance documents the bf16-operand / f32-accumulate MXU path vs the
    # f32 HIGHEST XLA reference (expected max abs err ~1e-2 at these scales).
    max_err = float(jnp.max(jnp.abs(out - ref)))
    assert max_err < 3e-2, f"mismatch vs reference: max_err={max_err}"

    print("KERNEL_OK")
</pallas_src>

<mosaic_0001>
module attributes {stable_mosaic.version = 11 : i64} {
  func.func @_basic_block_kernel(%arg0: i32, %arg1: memref<128x128xf32, #tpu.memory_space<vmem>>, %arg2: memref<384x128xbf16, #tpu.memory_space<vmem>>, %arg3: memref<1x128xf32, #tpu.memory_space<vmem>>, %arg4: memref<1x128xf32, #tpu.memory_space<vmem>>, %arg5: memref<384x128xbf16, #tpu.memory_space<vmem>>, %arg6: memref<1x128xf32, #tpu.memory_space<vmem>>, %arg7: memref<1x128xf32, #tpu.memory_space<vmem>>, %arg8: memref<128x128xf32, #tpu.memory_space<vmem>>, %arg9: memref<130x128xf32, #tpu.memory_space<vmem>>) attributes {dimension_semantics = [#tpu.dimension_semantics<parallel>], iteration_bounds = array<i64: 2>, scalar_prefetch = 0 : i64, scratch_operands = 1 : i64, tpu.core_type = #tpu.core_type<tc>, window_params = [{transform_indices = @transform_0, window_bounds = array<i64: 128, 128>}, {pipeline_mode = #tpu.pipeline_mode<synchronous>, transform_indices = @transform_1, window_bounds = array<i64: 384, 128>}, {pipeline_mode = #tpu.pipeline_mode<synchronous>, transform_indices = @transform_2, window_bounds = array<i64: 1, 128>}, {pipeline_mode = #tpu.pipeline_mode<synchronous>, transform_indices = @transform_3, window_bounds = array<i64: 1, 128>}, {pipeline_mode = #tpu.pipeline_mode<synchronous>, transform_indices = @transform_4, window_bounds = array<i64: 384, 128>}, {pipeline_mode = #tpu.pipeline_mode<synchronous>, transform_indices = @transform_5, window_bounds = array<i64: 1, 128>}, {pipeline_mode = #tpu.pipeline_mode<synchronous>, transform_indices = @transform_6, window_bounds = array<i64: 1, 128>}, {transform_indices = @transform_7, window_bounds = array<i64: 128, 128>}]} {
    %0 = tpu.iota {dimensions = array<i32: 1>} : vector<8x16x128xi32>
    %1 = vector.shape_cast %0 : vector<8x16x128xi32> to vector<128x128xi32>
    %c0_i32 = arith.constant 0 : i32
    %2 = vector.broadcast %c0_i32 : i32 to vector<128x128xi32>
    %3 = arith.cmpi eq, %1, %2 : vector<128x128xi32>
    %c15_i32 = arith.constant 15 : i32
    %4 = vector.broadcast %c15_i32 : i32 to vector<128x128xi32>
    %5 = arith.cmpi eq, %1, %4 : vector<128x128xi32>
    %c0_i32_0 = arith.constant 0 : i32
    %6 = arith.cmpi eq, %arg0, %c0_i32_0 : i32
    %7 = arith.extui %6 : i1 to i32
    %c0_i32_1 = arith.constant 0 : i32
    %8 = arith.cmpi ne, %7, %c0_i32_1 : i32
    scf.if %8 {
      %cst_50 = arith.constant 0.000000e+00 : f32
      %67 = vector.broadcast %cst_50 : f32 to vector<1x128xf32>
      %c0_51 = arith.constant 0 : index
      %c0_52 = arith.constant 0 : index
      %68 = vector.load %arg9[%c0_51, %c0_52] : memref<130x128xf32, #tpu.memory_space<vmem>>, vector<1x128xf32>
      tpu.vector_store %arg9[%c0_51, %c0_52], %67 {strides = array<i32>} : memref<130x128xf32, #tpu.memory_space<vmem>>, vector<1x128xf32>,
      %cst_53 = arith.constant 0.000000e+00 : f32
      %69 = vector.broadcast %cst_53 : f32 to vector<1x128xf32>
      %c129 = arith.constant 129 : index
      %c0_54 = arith.constant 0 : index
      %70 = vector.load %arg9[%c129, %c0_54] : memref<130x128xf32, #tpu.memory_space<vmem>>, vector<1x128xf32>
      tpu.vector_store %arg9[%c129, %c0_54], %69 {strides = array<i32>} : memref<130x128xf32, #tpu.memory_space<vmem>>, vector<1x128xf32>,
    } else {
    }
    %c0 = arith.constant 0 : index
    %c0_2 = arith.constant 0 : index
    %9 = vector.load %arg1[%c0, %c0_2] : memref<128x128xf32, #tpu.memory_space<vmem>>, vector<128x128xf32>
    %c1 = arith.constant 1 : index
    %c0_3 = arith.constant 0 : index
    %10 = vector.load %arg9[%c1, %c0_3] : memref<130x128xf32, #tpu.memory_space<vmem>>, vector<128x128xf32>
    tpu.vector_store %arg9[%c1, %c0_3], %9 {strides = array<i32>} : memref<130x128xf32, #tpu.memory_space<vmem>>, vector<128x128xf32>,
    %c0_4 = arith.constant 0 : index
    %c0_5 = arith.constant 0 : index
    %11 = vector.load %arg9[%c0_4, %c0_5] : memref<130x128xf32, #tpu.memory_space<vmem>>, vector<128x128xf32>
    %cst = arith.constant 0.000000e+00 : f32
    %12 = vector.broadcast %cst : f32 to vector<128x128xf32>
    %13 = arith.select %3, %12, %11 : vector<128x128xi1>, vector<128x128xf32>
    %14 = arith.truncf %13 : vector<128x128xf32> to vector<128x128xbf16>
    %c1_6 = arith.constant 1 : index
    %c0_7 = arith.constant 0 : index
    %15 = vector.load %arg9[%c1_6, %c0_7] : memref<130x128xf32, #tpu.memory_space<vmem>>, vector<128x128xf32>
    %16 = arith.truncf %15 : vector<128x128xf32> to vector<128x128xbf16>
    %c2 = arith.constant 2 : index
    %c0_8 = arith.constant 0 : index
    %17 = vector.load %arg9[%c2, %c0_8] : memref<130x128xf32, #tpu.memory_space<vmem>>, vector<128x128xf32>
    %cst_9 = arith.constant 0.000000e+00 : f32
    %18 = vector.broadcast %cst_9 : f32 to vector<128x128xf32>
    %19 = arith.select %5, %18, %17 : vector<128x128xi1>, vector<128x128xf32>
    %20 = arith.truncf %19 : vector<128x128xf32> to vector<128x128xbf16>
    %c0_10 = arith.constant 0 : index
    %c0_11 = arith.constant 0 : index
    %21 = vector.load %arg2[%c0_10, %c0_11] : memref<384x128xbf16, #tpu.memory_space<vmem>>, vector<128x128xbf16>
    %cst_12 = arith.constant dense<0.000000e+00> : vector<128x128xf32>
    %22 = tpu.matmul %14, %21, %cst_12 {dimension_numbers = #tpu.dot_dimension_numbers<[1], [0], [0], [1], [0, 0, 1, 1], [], []>} : vector<128x128xbf16>, vector<128x128xbf16>, vector<128x128xf32> -> vector<128x128xf32>
    %c128 = arith.constant 128 : index
    %c0_13 = arith.constant 0 : index
    %23 = vector.load %arg2[%c128, %c0_13] : memref<384x128xbf16, #tpu.memory_space<vmem>>, vector<128x128xbf16>
    %cst_14 = arith.constant dense<0.000000e+00> : vector<128x128xf32>
    %24 = tpu.matmul %16, %23, %cst_14 {dimension_numbers = #tpu.dot_dimension_numbers<[1], [0], [0], [1], [0, 0, 1, 1], [], []>} : vector<128x128xbf16>, vector<128x128xbf16>, vector<128x128xf32> -> vector<128x128xf32>
    %25 = arith.addf %22, %24 : vector<128x128xf32>
    %c256 = arith.constant 256 : index
    %c0_15 = arith.constant 0 : index
    %26 = vector.load %arg2[%c256, %c0_15] : memref<384x128xbf16, #tpu.memory_space<vmem>>, vector<128x128xbf16>
    %cst_16 = arith.constant dense<0.000000e+00> : vector<128x128xf32>
    %27 = tpu.matmul %20, %26, %cst_16 {dimension_numbers = #tpu.dot_dimension_numbers<[1], [0], [0], [1], [0, 0, 1, 1], [], []>} : vector<128x128xbf16>, vector<128x128xbf16>, vector<128x128xf32> -> vector<128x128xf32>
    %28 = arith.addf %25, %27 : vector<128x128xf32>
    %c0_17 = arith.constant 0 : index
    %c0_18 = arith.constant 0 : index
    %29 = vector.load %arg3[%c0_17, %c0_18] : memref<1x128xf32, #tpu.memory_space<vmem>>, vector<1x128xf32>
    %30 = vector.broadcast %29 : vector<1x128xf32> to vector<128x128xf32>
    %31 = arith.mulf %28, %30 : vector<128x128xf32>
    %c0_19 = arith.constant 0 : index
    %c0_20 = arith.constant 0 : index
    %32 = vector.load %arg4[%c0_19, %c0_20] : memref<1x128xf32, #tpu.memory_space<vmem>>, vector<1x128xf32>
    %33 = vector.broadcast %32 : vector<1x128xf32> to vector<128x128xf32>
    %34 = arith.addf %31, %33 : vector<128x128xf32>
    %cst_21 = arith.constant 0.000000e+00 : f32
    %35 = vector.broadcast %cst_21 : f32 to vector<128x128xf32>
    %36 = arith.maximumf %34, %35 : vector<128x128xf32>
    %c1_22 = arith.constant 1 : index
    %c0_23 = arith.constant 0 : index
    %37 = vector.load %arg9[%c1_22, %c0_23] : memref<130x128xf32, #tpu.memory_space<vmem>>, vector<128x128xf32>
    tpu.vector_store %arg9[%c1_22, %c0_23], %36 {strides = array<i32>} : memref<130x128xf32, #tpu.memory_space<vmem>>, vector<128x128xf32>,
    %c0_24 = arith.constant 0 : index
    %c0_25 = arith.constant 0 : index
    %38 = vector.load %arg9[%c0_24, %c0_25] : memref<130x128xf32, #tpu.memory_space<vmem>>, vector<128x128xf32>
    %cst_26 = arith.constant 0.000000e+00 : f32
    %39 = vector.broadcast %cst_26 : f32 to vector<128x128xf32>
    %40 = arith.select %3, %39, %38 : vector<128x128xi1>, vector<128x128xf32>
    %41 = arith.truncf %40 : vector<128x128xf32> to vector<128x128xbf16>
    %c1_27 = arith.constant 1 : index
    %c0_28 = arith.constant 0 : index
    %42 = vector.load %arg9[%c1_27, %c0_28] : memref<130x128xf32, #tpu.memory_space<vmem>>, vector<128x128xf32>
    %43 = arith.truncf %42 : vector<128x128xf32> to vector<128x128xbf16>
    %c2_29 = arith.constant 2 : index
    %c0_30 = arith.constant 0 : index
    %44 = vector.load %arg9[%c2_29, %c0_30] : memref<130x128xf32, #tpu.memory_space<vmem>>, vector<128x128xf32>
    %cst_31 = arith.constant 0.000000e+00 : f32
    %45 = vector.broadcast %cst_31 : f32 to vector<128x128xf32>
    %46 = arith.select %5, %45, %44 : vector<128x128xi1>, vector<128x128xf32>
    %47 = arith.truncf %46 : vector<128x128xf32> to vector<128x128xbf16>
    %c0_32 = arith.constant 0 : index
    %c0_33 = arith.constant 0 : index
    %48 = vector.load %arg5[%c0_32, %c0_33] : memref<384x128xbf16, #tpu.memory_space<vmem>>, vector<128x128xbf16>
    %cst_34 = arith.constant dense<0.000000e+00> : vector<128x128xf32>
    %49 = tpu.matmul %41, %48, %cst_34 {dimension_numbers = #tpu.dot_dimension_numbers<[1], [0], [0], [1], [0, 0, 1, 1], [], []>} : vector<128x128xbf16>, vector<128x128xbf16>, vector<128x128xf32> -> vector<128x128xf32>
    %c128_35 = arith.constant 128 : index
    %c0_36 = arith.constant 0 : index
    %50 = vector.load %arg5[%c128_35, %c0_36] : memref<384x128xbf16, #tpu.memory_space<vmem>>, vector<128x128xbf16>
    %cst_37 = arith.constant dense<0.000000e+00> : vector<128x128xf32>
    %51 = tpu.matmul %43, %50, %cst_37 {dimension_numbers = #tpu.dot_dimension_numbers<[1], [0], [0], [1], [0, 0, 1, 1], [], []>} : vector<128x128xbf16>, vector<128x128xbf16>, vector<128x128xf32> -> vector<128x128xf32>
    %52 = arith.addf %49, %51 : vector<128x128xf32>
    %c256_38 = arith.constant 256 : index
    %c0_39 = arith.constant 0 : index
    %53 = vector.load %arg5[%c256_38, %c0_39] : memref<384x128xbf16, #tpu.memory_space<vmem>>, vector<128x128xbf16>
    %cst_40 = arith.constant dense<0.000000e+00> : vector<128x128xf32>
    %54 = tpu.matmul %47, %53, %cst_40 {dimension_numbers = #tpu.dot_dimension_numbers<[1], [0], [0], [1], [0, 0, 1, 1], [], []>} : vector<128x128xbf16>, vector<128x128xbf16>, vector<128x128xf32> -> vector<128x128xf32>
    %55 = arith.addf %52, %54 : vector<128x128xf32>
    %c0_41 = arith.constant 0 : index
    %c0_42 = arith.constant 0 : index
    %56 = vector.load %arg6[%c0_41, %c0_42] : memref<1x128xf32, #tpu.memory_space<vmem>>, vector<1x128xf32>
    %57 = vector.broadcast %56 : vector<1x128xf32> to vector<128x128xf32>
    %58 = arith.mulf %55, %57 : vector<128x128xf32>
    %c0_43 = arith.constant 0 : index
    %c0_44 = arith.constant 0 : index
    %59 = vector.load %arg7[%c0_43, %c0_44] : memref<1x128xf32, #tpu.memory_space<vmem>>, vector<1x128xf32>
    %60 = vector.broadcast %59 : vector<1x128xf32> to vector<128x128xf32>
    %61 = arith.addf %58, %60 : vector<128x128xf32>
    %c0_45 = arith.constant 0 : index
    %c0_46 = arith.constant 0 : index
    %62 = vector.load %arg1[%c0_45, %c0_46] : memref<128x128xf32, #tpu.memory_space<vmem>>, vector<128x128xf32>
    %63 = arith.addf %61, %62 : vector<128x128xf32>
    %cst_47 = arith.constant 0.000000e+00 : f32
    %64 = vector.broadcast %cst_47 : f32 to vector<128x128xf32>
    %65 = arith.maximumf %63, %64 : vector<128x128xf32>
    %c0_48 = arith.constant 0 : index
    %c0_49 = arith.constant 0 : index
    %66 = vector.load %arg8[%c0_48, %c0_49] : memref<128x128xf32, #tpu.memory_space<vmem>>, vector<128x128xf32>
    tpu.vector_store %arg8[%c0_48, %c0_49], %65 {strides = array<i32>} : memref<128x128xf32, #tpu.memory_space<vmem>>, vector<128x128xf32>,
    return
  }
  func.func @transform_0(%arg0: i32) -> (i32, i32) {
    %c0_i32 = arith.constant 0 : i32
    %c0_i32_0 = arith.constant 0 : i32
    return %arg0, %c0_i32 : i32, i32
  }
  func.func @transform_1(%arg0: i32) -> (i32, i32) {
    %c0_i32 = arith.constant 0 : i32
    %c0_i32_0 = arith.constant 0 : i32
    %c0_i32_1 = arith.constant 0 : i32
    return %c0_i32, %c0_i32_0 : i32, i32
  }
  func.func @transform_2(%arg0: i32) -> (i32, i32) {
    %c0_i32 = arith.constant 0 : i32
    %c0_i32_0 = arith.constant 0 : i32
    %c0_i32_1 = arith.constant 0 : i32
    return %c0_i32, %c0_i32_0 : i32, i32
  }
  func.func @transform_3(%arg0: i32) -> (i32, i32) {
    %c0_i32 = arith.constant 0 : i32
    %c0_i32_0 = arith.constant 0 : i32
    %c0_i32_1 = arith.constant 0 : i32
    return %c0_i32, %c0_i32_0 : i32, i32
  }
  func.func @transform_4(%arg0: i32) -> (i32, i32) {
    %c0_i32 = arith.constant 0 : i32
    %c0_i32_0 = arith.constant 0 : i32
    %c0_i32_1 = arith.constant 0 : i32
    return %c0_i32, %c0_i32_0 : i32, i32
  }
  func.func @transform_5(%arg0: i32) -> (i32, i32) {
    %c0_i32 = arith.constant 0 : i32
    %c0_i32_0 = arith.constant 0 : i32
    %c0_i32_1 = arith.constant 0 : i32
    return %c0_i32, %c0_i32_0 : i32, i32
  }
  func.func @transform_6(%arg0: i32) -> (i32, i32) {
    %c0_i32 = arith.constant 0 : i32
    %c0_i32_0 = arith.constant 0 : i32
    %c0_i32_1 = arith.constant 0 : i32
    return %c0_i32, %c0_i32_0 : i32, i32
  }
  func.func @transform_7(%arg0: i32) -> (i32, i32) {
    %c0_i32 = arith.constant 0 : i32
    %c0_i32_0 = arith.constant 0 : i32
    return %arg0, %c0_i32 : i32, i32
  }
}

</mosaic_0001>

<bundles_post_ra>
// kernel: tpu_custom_call.1
= control target key start
LH: loop header
LB: loop body
LE: loop exit
PB: predicated region body
PF: predicated region fallthrough
CT: control target
= control target key end

     0   :  { %12 = vsyncpa [#allocation4], 0  ;;  %s3235_s0 = inlined_call_operand.hbm [shape: f32[256,128], index: 0, kind: input, shape index: {}]   ;;  %s3236_s1 = inlined_call_operand.hbm [shape: bf16[384,128], index: 1, kind: input, shape index: {}]   ;;  %s3237_s2 = inlined_call_operand.vmem [shape: f32[1,128], index: 2, kind: input, shape index: {}]   ;;  %s3238_s3 = inlined_call_operand.vmem [shape: f32[1,128], index: 3, kind: input, shape index: {}]   ;;  %s3239_s4 = inlined_call_operand.hbm [shape: bf16[384,128], index: 4, kind: input, shape index: {}]   ;;  %s3240_s5 = inlined_call_operand.vmem [shape: f32[1,128], index: 5, kind: input, shape index: {}]   ;;  %s3241_s6 = inlined_call_operand.vmem [shape: f32[1,128], index: 6, kind: input, shape index: {}]   ;;  %s3242_s7 = inlined_call_operand.hbm [shape: f32[256,128], index: 7, kind: output, shape index: {}]  }
   0x1   :  { %14 = vsyncpa [#allocation4 + $0x1], 0 }
   0x2   :  { %15 = vsyncpa [#allocation7], 0 }
   0x3   :  { %16 = vsyncpa [#allocation5], 0 }
   0x4   :  { %18 = vsyncpa [#allocation5 + $0x1], 0  ;;  %s2762_s24 = smov 0   ;;  %s2764_s25 = smov 0  }
   0x5   :  { %s2766_s26 = smov 0   ;;  %s2768_s27 = smov 0  }
   0x6 LB: > { %s2783_s28 = sadd.s32 4294967295, %s2708_s27   ;;  %s1874_s29 = sadd.s32 4294967294, %s2708_s27   ;;  %s2708_s27 = sphi %s2768_s27, %s3267_s27   ;;  %s2704_s26 = sphi %s2766_s26, %s3266_s26   ;;  %s2700_s25 = sphi %s2764_s25, %s3265_s25   ;;  %s2696_s24 = sphi %s2762_s24, %s3264_s24  }
   0x7   : > { %p44_p0 = scmp.ne.s32.totalorder %s2700_s25, %s2696_s24  ;;  %p3243_p1 = scmp.eq.s32.totalorder %s2783_s28, 0 }
   0x8   : > { %p200_p3 = scmp.eq.s32.totalorder %s1874_s29, 1  ;;  %p1875_p5 = scmp.ge.s32.totalorder %s2708_s27, 1 }
   0x9   : > { %p2792_p4 = por %p3243_p1, %p44_p0  ;;  %p207_p7 = scmp.lt.s32.totalorder %s2708_s27, 3 }
   0xa   : > { %p2797_p6 = por %p200_p3, %p44_p0  ;;  %s2710_s10 = smov [#allocation6]  }
   0xb   : > { %s3246_s30 = scalar_select %p2792_p4, 1, 0 }
   0xc   : > { %s3247_s8 = scalar_select %p2797_p6, 1, 0 }
   0xd   : > { %p2803_p9 = pnand %p1875_p5, %p207_p7  ;;  %s219_s11 = sshll.u32 %s2710_s10, 4  ;;  %s2807_s11 = int_to_ptr.vmem [resolvable:$true] %s219_s11 }
   0xe   : > { %s2711_s13 = smov [#allocation8]   ;;  %s2552_s17 = scalar_lea.hbm %s3236_s1, 3072 }
   0xf   : > { %p2441_p10 = pneg %p2803_p9  ;;  %s238_s14 = sshll.u32 %s2711_s13, 4  ;;  %s2818_s14 = int_to_ptr.vmem [resolvable:$true] %s238_s14 }
  0x10   : > { %p2553_p13 = scmp.ne.s32.totalorder %s3236_s1, %s2552_s17  ;;  %p2559_p7 = scmp.lt.u32.totalorder %s2552_s17, %s3236_s1 }
  0x11   : > { %p2814_p12 = pnand %p2441_p10, %p3243_p1 }
  0x13   : > { %p2554_p0 = pneg %p2814_p12 }
  0x15   : > { %p2555_p3 = pnand %p2554_p0, %p2553_p13 }
  0x17   : > { %p2556_p5 = pneg %p2555_p3 }
  0x19   : > { %p2561_p10 = pnand %p2559_p7, %p2556_p5 }
  0x1b   : > { %2564 = shalt.err (!%p2561_p10)
}
  0x1c   : > { %s2565_s22 = scalar_lea.vmem %s2807_s11, 3072  ;;  %p2573_p2 = scmp.lt.s32.totalorder %s2807_s11, %s2807_s11 }
  0x1d   : > { %p2566_p11 = scmp.ne.s32.totalorder %s2807_s11, %s2565_s22  ;;  %p2574_p13 = scmp.lt.s32.totalorder %s2565_s22, %s2565_s22 }
  0x1f   : > { %p2568_p8 = pnand %p2566_p11, %p2554_p0  ;;  %p2575_p3 = por %p2574_p13, %p2573_p2 }
  0x21   : > { %p2569_p1 = pneg %p2568_p8 }
  0x23   : > { %p2576_p6 = pnand %p2575_p3, %p2569_p1 }
  0x25   : > { %2579 = shalt.err (!%p2576_p6)
}
  0x26   : > { %s2712_s23 = smov 64   ;;  %s2713_s29 = smov 4  }
  0x27   : > { %2444 = dma.hbm_to_vmem [thread:$0]  (!%p2814_p12), %s3236_s1, 3072, %s2807_s11, [#allocation7], %s2712_s23, %s2712_s23, %s2713_s29  }
  0x28   : > { %s2580_s17 = scalar_lea.hbm %s3239_s4, 3072 }
  0x29   : > { %p2581_p2 = scmp.ne.s32.totalorder %s3239_s4, %s2580_s17  ;;  %p2587_p8 = scmp.lt.u32.totalorder %s2580_s17, %s3239_s4 }
  0x2b   : > { %p2583_p1 = pnand %p2581_p2, %p2554_p0 }
  0x2d   : > { %p2584_p6 = pneg %p2583_p1 }
  0x2f   : > { %p2589_p11 = pnand %p2587_p8, %p2584_p6 }
  0x31   : > { %2592 = shalt.err (!%p2589_p11)
}
  0x32   : > { %s2593_s11 = scalar_lea.vmem %s2818_s14, 3072  ;;  %p2601_p13 = scmp.lt.s32.totalorder %s2818_s14, %s2818_s14 }
  0x33   : > { %p2594_p5 = scmp.ne.s32.totalorder %s2818_s14, %s2593_s11  ;;  %p2602_p3 = scmp.lt.s32.totalorder %s2593_s11, %s2593_s11 }
  0x35   : > { %p2596_p7 = pnand %p2594_p5, %p2554_p0  ;;  %p2603_p2 = por %p2602_p3, %p2601_p13 }
  0x37   : > { %p2597_p10 = pneg %p2596_p7 }
  0x39   : > { %p2604_p1 = pnand %p2603_p2, %p2597_p10 }
  0x3b   : > { %2607 = shalt.err (!%p2604_p1)
}
  0x3c   : > { %2447 = dma.hbm_to_vmem [thread:$0]  (!%p2814_p12), %s3239_s4, 3072, %s2818_s14, [#allocation7], %s2712_s23, %s2712_s23, %s2713_s29  }
  0x3d   : > { %s2873_s13 = sadd.s32 1, %s2708_s27   ;;  %s31_s12 = sadd.s32 1, %s2704_s26 }
  0x3e   : > { %s28_s15 = ssub.s32 %s2708_s27, %s2873_s13  ;;  %p38_p0 = scmp.ne.s32.totalorder %s2704_s26, %s2700_s25 }
  0x3f   : > { %p29_p6 = scmp.eq.s32.totalorder %s28_s15, 0  ;;  %p39_p8 = scmp.eq.s32.totalorder %s2708_s27, 0 }
  0x40   : > { %p3250_p11 = scmp.eq.s32.totalorder %s2783_s28, 1  ;;  %p2458_p7 = scmp.lt.s32.totalorder %s2708_s27, 2 }
  0x41   : > { %s2889_s17 = scalar_select %p29_p6, %s2704_s26, %s31_s12  }
  0x42   : > { %p2883_p5 = por %p3250_p11, %p38_p0  ;;  %p40_p10 = por %p39_p8, %p38_p0 }
  0x43   : > { %s258_s18 = sand.u32 1, %s2704_s26   ;;  %s2073_s14 = sshll.u32 %s2708_s27, 11 }
  0x44   : > { %s3251_s16 = scalar_select %p2883_p5, 1, 0 }
  0x45   : > { %s1879_s19 = sshll.u32 %s258_s18, 7  ;;  %s2896_s20 = scalar_lea.hbm %s3235_s0, %s2073_s14 }
  0x46   : > { %s262_s21 = scalar_lea.vmem [#allocation3], %s1879_s19  ;;  %p2900_p12 = pnand %p2458_p7, %p40_p10 }
  0x47   : > { %s269_s11 = sshll.u32 %s262_s21, 4  ;;  %s2904_s10 = scalar_lea.sflag [#allocation4], %s258_s18  ;;  %s2898_s11 = int_to_ptr.vmem [resolvable:$true] %s269_s11 }
  0x48   : > { %s2608_s12 = scalar_lea.hbm %s2896_s20, 2048  ;;  %p2610_p3 = pneg %p2900_p12 }
  0x49   : > { %p2609_p13 = scmp.ne.s32.totalorder %s2896_s20, %s2608_s12  ;;  %s2613_s14 = scalar_lea.hbm %s3235_s0, 4096 }
  0x4a   : > { %p2614_p0 = scmp.lt.u32.totalorder %s2896_s20, %s3235_s0  ;;  %p2615_p6 = scmp.lt.u32.totalorder %s2613_s14, %s2608_s12 }
  0x4b   : > { %p2611_p2 = pnand %p2610_p3, %p2609_p13  ;;  %p2617_p11 = scmp.lt.u32.totalorder %s2608_s12, %s2896_s20 }
  0x4c   : > { %p2616_p8 = por %p2615_p6, %p2614_p0 }
  0x4d   : > { %p2612_p1 = pneg %p2611_p2 }
  0x4e   : > { %p2618_p7 = por %p2617_p11, %p2616_p8 }
  0x50   : > { %p2619_p10 = pnand %p2618_p7, %p2612_p1 }
  0x52   : > { %2622 = shalt.err (!%p2619_p10)
}
  0x53   : > { %s2623_s18 = scalar_lea.vmem %s2898_s11, 2048  ;;  %s2714_s21 = smov [#allocation3]  }
  0x54   : > { %p2624_p13 = scmp.ne.s32.totalorder %s2898_s11, %s2623_s18  ;;  %s2628_s15 = sshll.u32 %s2714_s21, 4  ;;  %s2629_s15 = int_to_ptr.vmem [resolvable:$false] %s2628_s15 }
  0x55   : > { %s2630_s19 = scalar_lea.vmem %s2629_s15, 4096  ;;  %p2631_p4 = scmp.lt.s32.totalorder %s2898_s11, %s2629_s15 }
  0x56   : > { %p2626_p2 = pnand %p2624_p13, %p2610_p3  ;;  %p2632_p0 = scmp.lt.s32.totalorder %s2630_s19, %s2623_s18 }
  0x58   : > { %p2627_p5 = pneg %p2626_p2  ;;  %p2633_p6 = por %p2632_p0, %p2631_p4 }
  0x5a   : > { %p2634_p8 = pnand %p2633_p6, %p2627_p5 }
  0x5c   : > { %2637 = shalt.err (!%p2634_p8)
}
  0x5d   : > { %s2715_s12 = smov 128   ;;  %s2716_s14 = smov 8  }
  0x5e   : > { %2451 = dma.hbm_to_vmem [thread:$0]  (!%p2900_p12), %s2896_s20, 2048, %s2898_s11, %s2904_s10, %s2715_s12, %s2715_s12, %s2716_s14  }
  0x5f   : > { %281 = sbr.rel (%p2803_p9) target bundleno = 762 (0x2fa), region = 48  ;;  %s2935_s23 = sand.u32 (!%p2803_p9), 1, %s2700_s25  }
  0x60   : > { %s1883_s29 = sshll.u32 (!%p2803_p9), %s2935_s23, 7  ;;  %s284_s18 = scalar_lea.sflag (!%p2803_p9), [#allocation4], %s2935_s23 }
  0x61   : > { %s2939_s21 = scalar_lea.vmem (!%p2803_p9), [#allocation3], %s1883_s29  ;;  %p3253_p4 = scmp.ne.s32.totalorder (!%p2803_p9), %s3246_s30, 0 }
  0x66   : > { %2683 = dma.done.wait (%p3253_p4), %s284_s18, 2048  }
  0x67   : > { %2685 = vsyncadd (%p3253_p4), %s284_s18, 4294965248  ;;  %p3254_p5 = scmp.eq.s32.totalorder %s2783_s28, 0 }
  0x69   : > { %2687 = dma.done.wait (%p3254_p5), [#allocation7], 6144   ;;  %p3255_p9 = pmov %p3254_p5 }
  0x6a   : > { %v329_v0 = vlaneseq  ;;  %s2954_s9 = scalar_lea.vmem [#allocation9], %s1883_s29  ;;  %p3256_p12 = scmp.ne.s32.totalorder %s2783_s28, 0 }
  0x6b   : > { %2689 = vsyncadd (%p3255_p9), [#allocation7], 4294961152  ;;  %v2717_v3 = vmov (!%p3256_p12), 0.0  }
  0x6c   : > { %v2949_v1 = vshrl.u32 %v329_v0, 7  ;;  %339 = sbr.rel (%p3256_p12) target bundleno = 115 (0x73), region = 64  ;;  %340 = vst [vmem:[#allocation2] sm:$0x1] (!%p3256_p12), %v2717_v3  ;;  %341 = vst [vmem:[#allocation2 + $0x81] sm:$0x1] (!%p3256_p12), %v2717_v3 }
  0x6e   : > { %v2952_v2 = vadd.s32 8, %v2949_v1 }
  0x73 PF: > { %v2504_v4 = vld [vmem:[#allocation6 + $0x40] sm:$0xff]   ;;  %v2505_v5 = vld [vmem:[#allocation6 + $0x48] sm:$0xff]   ;;  %v2506_v6 = vld [vmem:[#allocation6 + $0x50] sm:$0xff]   ;;  %vm2075_vm0 = vcmp.ne.s32.totalorder %v2949_v1, 0  ;;  %vm2718_vm1 = vmmov 1   ;;  %vm2076_vm3 = vcmp.ne.s32.totalorder %v2952_v2, 15 }
  0x74   : > { %2173 = vmatprep.subr.bf16.mxu0 %v2504_v4  ;;  %v2507_v7 = vld [vmem:[#allocation6 + $0x58] sm:$0xff]   ;;  %v342_v8 = vld [vmem:[%s2939_s21] sm:$0xff]  ;;  %v343_v9 = vld [vmem:[%s2939_s21 + $0x8] sm:$0xff]  ;;  %s2074_s14 = sshll.u32 %s2783_s28, 11  ;;  %s1782_s29 = sshll.u32 %s2954_s9, 4  ;;  %s3188_s29 = int_to_ptr.vmem [resolvable:$true] %s1782_s29 }
  0x75   : > { %2174 = vmatpush3.bf16.msra.mxu0 %v2504_v4  ;;  %v2961_v10 = vld [vmem:[%s2939_s21 + $0x10] sm:$0xff]  ;;  %358 = vst [vmem:[#allocation2 + $0x1] sm:$0xff] %v342_v8  ;;  %359 = vst [vmem:[#allocation2 + $0x9] sm:$0xff] %v343_v9  ;;  %v430_v11 = vpack.c.bf16 %v343_v9, %v342_v8  ;;  %v345_v12 = vld [vmem:[%s2939_s21 + $0x18] sm:$0xff]  ;;  %s3186_s20 = scalar_lea.hbm %s3242_s7, %s2074_s14  ;;  %s1769_s28 = scalar_lea.sflag [#allocation5], %s2935_s23 }
  0x76   : > { %2175 = vmatprep.subr.bf16.mxu0 %v2505_v5  ;;  %360 = vst [vmem:[#allocation2 + $0x11] sm:$0xff] %v2961_v10  ;;  %361 = vst [vmem:[#allocation2 + $0x19] sm:$0xff] %v345_v12  ;;  %v2508_v13 = vld [vmem:[#allocation6 + $0x60] sm:$0xff]   ;;  %v347_v15 = vld [vmem:[%s2939_s21 + $0x28] sm:$0xff]  ;;  %v431_v30 = vpack.c.bf16 %v345_v12, %v2961_v10  ;;  %p3261_p1 = scmp.ne.s32.totalorder %s3251_s16, 0  ;;  %s2719_s11 = smov [#allocation9]  }
  0x77   : > { %2189 = vmatprep.mubr.bf16.mxu0 %v430_v11  ;;  %v346_v14 = vld [vmem:[%s2939_s21 + $0x20] sm:$0xff]  ;;  %363 = vst [vmem:[#allocation2 + $0x29] sm:$0xff] %v347_v15  ;;  %v2968_v16 = vld [vmem:[%s2939_s21 + $0x30] sm:$0xff]  ;;  %v349_v17 = vld [vmem:[%s2939_s21 + $0x38] sm:$0xff]  ;;  %s2642_s22 = sshll.u32 %s2719_s11, 4  ;;  %s2643_s22 = int_to_ptr.vmem [resolvable:$false] %s2642_s22 }
  0x78   : > { %362 = vst [vmem:[#allocation2 + $0x21] sm:$0xff] %v346_v14  ;;  %364 = vst [vmem:[#allocation2 + $0x31] sm:$0xff] %v2968_v16  ;;  %v350_v18 = vld [vmem:[%s2939_s21 + $0x40] sm:$0xff]  ;;  %v351_v19 = vld [vmem:[%s2939_s21 + $0x48] sm:$0xff]  ;;  %v432_v31 = vpack.c.bf16 %v347_v15, %v346_v14  ;;  %v433_v34 = vpack.c.bf16 %v349_v17, %v2968_v16  ;;  %s2644_s10 = scalar_lea.vmem %s2643_s22, 4096  ;;  %p2645_p10 = scmp.lt.s32.totalorder %s3188_s29, %s2643_s22 }
  0x79   : > { %2176 = vmatpush3.bf16.msra.mxu0 %v2505_v5  ;;  %365 = vst [vmem:[#allocation2 + $0x39] sm:$0xff] %v349_v17  ;;  %366 = vst [vmem:[#allocation2 + $0x41] sm:$0xff] %v350_v18  ;;  %v2975_v20 = vld [vmem:[%s2939_s21 + $0x50] sm:$0xff]  ;;  %v353_v21 = vld [vmem:[%s2939_s21 + $0x58] sm:$0xff]  ;;  %v434_v35 = vpack.c.bf16 %v351_v19, %v350_v18 }
  0x7a   : > { %2177 = vmatprep.subr.bf16.mxu0 %v2506_v6  ;;  %v2509_v22 = vld [vmem:[#allocation6 + $0x68] sm:$0xff]   ;;  %367 = vst [vmem:[#allocation2 + $0x49] sm:$0xff] %v351_v19  ;;  %368 = vst [vmem:[#allocation2 + $0x51] sm:$0xff] %v2975_v20  ;;  %v354_v23 = vld [vmem:[%s2939_s21 + $0x60] sm:$0xff]  ;;  %v435_v41 = vpack.c.bf16 %v353_v21, %v2975_v20 }
  0x7b   : > { %369 = vst [vmem:[#allocation2 + $0x59] sm:$0xff] %v353_v21  ;;  %v355_v24 = vld [vmem:[%s2939_s21 + $0x68] sm:$0xff]  ;;  %v2982_v25 = vld [vmem:[%s2939_s21 + $0x70] sm:$0xff]  ;;  %370 = vst [vmem:[#allocation2 + $0x61] sm:$0xff] %v354_v23 }
  0x7c   : > { %371 = vst [vmem:[#allocation2 + $0x69] sm:$0xff] %v355_v24  ;;  %v357_v26 = vld [vmem:[%s2939_s21 + $0x78] sm:$0xff]  ;;  %372 = vst [vmem:[#allocation2 + $0x71] sm:$0xff] %v2982_v25  ;;  %v2510_v27 = vld [vmem:[#allocation6 + $0x70] sm:$0xff]   ;;  %v436_v43 = vpack.c.bf16 %v355_v24, %v354_v23 }
  0x7d   : > { %2178 = vmatpush3.bf16.msra.mxu0 %v2506_v6  ;;  %373 = vst [vmem:[#allocation2 + $0x79] sm:$0xff] %v357_v26  ;;  %v2511_v28 = vld [vmem:[#allocation6 + $0x78] sm:$0xff]   ;;  %v2512_v29 = vld [vmem:[#allocation6] sm:$0xff]   ;;  %v2513_v32 = vld [vmem:[#allocation6 + $0x8] sm:$0xff]   ;;  %v437_v48 = vpack.c.bf16 %v357_v26, %v2982_v25 }
  0x7e   : > { %2179 = vmatprep.subr.bf16.mxu0 %v2507_v7  ;;  %v2514_v33 = vld [vmem:[#allocation6 + $0x10] sm:$0xff]   ;;  %v2515_v36 = vld [vmem:[#allocation6 + $0x18] sm:$0xff]   ;;  %v2528_v37 = vld [vmem:[#allocation8 + $0x40] sm:$0xff]  }
  0x7f   : > { %v2529_v38 = vld [vmem:[#allocation8 + $0x48] sm:$0xff]   ;;  %v2516_v39 = vld [vmem:[#allocation6 + $0x20] sm:$0xff]   ;;  %2269 = vmatprep.subr.bf16.mxu1 %v2528_v37  ;;  %v2530_v40 = vld [vmem:[#allocation8 + $0x50] sm:$0xff]  }
  0x80   : > { %2270 = vmatpush3.bf16.msra.mxu1 %v2528_v37  ;;  %v2517_v42 = vld [vmem:[#allocation6 + $0x28] sm:$0xff]   ;;  %vm2993_vm2 = vmpackc.low %vm2718_vm1, %vm2075_vm0  ;;  %v2518_v45 = vld [vmem:[#allocation6 + $0x30] sm:$0xff]  }
  0x81   : > { %2180 = vmatpush3.bf16.msra.mxu0 %v2507_v7  ;;  %2271 = vmatprep.subr.bf16.mxu1 %v2529_v38  ;;  %v374_v46 = vld [vmem:[#allocation2] sm:$0xff]  ;;  %v375_v47 = vld [vmem:[#allocation2 + $0x8] sm:$0xff]  ;;  %v376_v51 = vld [vmem:[#allocation2 + $0x10] sm:$0xff] }
  0x82   : > { %2181 = vmatprep.subr.bf16.mxu0 %v2508_v13  ;;  %v2519_v49 = vld [vmem:[#allocation6 + $0x38] sm:$0xff]   ;;  %v1906_v50 = vpack.c.bf16 %v375_v47, %v374_v46  ;;  %v377_v52 = vld [vmem:[#allocation2 + $0x18] sm:$0xff]  ;;  %v2520_v53 = vld [vmem:[#allocation6 + $0x80] sm:$0xff]  }
  0x83   : > { %v378_v54 = vld [vmem:[#allocation2 + $0x20] sm:$0xff]  ;;  %v379_v55 = vld [vmem:[#allocation2 + $0x28] sm:$0xff]  ;;  %v1910_v56 = vpack.c.bf16 %v377_v52, %v376_v51  ;;  %v2521_v58 = vld [vmem:[#allocation6 + $0x88] sm:$0xff]  }
  0x84   : > { %2272 = vmatpush3.bf16.msra.mxu1 %v2529_v38  ;;  %v1914_v57 = vpack.c.bf16 %v379_v55, %v378_v54  ;;  %v380_v59 = vld [vmem:[#allocation2 + $0x30] sm:$0xff]  ;;  %v381_v60 = vld [vmem:[#allocation2 + $0x38] sm:$0xff]  ;;  %v382_v62 = vld [vmem:[#allocation2 + $0x40] sm:$0xff] }
  0x85   : > { %2182 = vmatpush3.bf16.msra.mxu0 %v2508_v13  ;;  %2273 = vmatprep.subr.bf16.mxu1 %v2530_v40  ;;  %v2522_v61 = vld [vmem:[#allocation6 + $0x90] sm:$0xff]   ;;  %v383_v63 = vld [vmem:[#allocation2 + $0x48] sm:$0xff]  ;;  %v1918_v0 = vpack.c.bf16 %v381_v60, %v380_v59  ;;  %v2523_v3 = vld [vmem:[#allocation6 + $0x98] sm:$0xff]  }
  0x86   : > { %2183 = vmatprep.subr.bf16.mxu0 %v2509_v22  ;;  %v1922_v1 = vpack.c.bf16 %v383_v63, %v382_v62  ;;  %v384_v4 = vld [vmem:[#allocation2 + $0x50] sm:$0xff]  ;;  %v385_v5 = vld [vmem:[#allocation2 + $0x58] sm:$0xff]  ;;  %v2524_v6 = vld [vmem:[#allocation6 + $0xa0] sm:$0xff]  }
  0x87   : > { %v386_v7 = vld [vmem:[#allocation2 + $0x60] sm:$0xff]  ;;  %v387_v8 = vld [vmem:[#allocation2 + $0x68] sm:$0xff]  ;;  %v1926_v9 = vpack.c.bf16 %v385_v5, %v384_v4  ;;  %v2525_v12 = vld [vmem:[#allocation6 + $0xa8] sm:$0xff]  }
  0x88   : > { %2274 = vmatpush3.bf16.msra.mxu1 %v2530_v40  ;;  %v1930_v11 = vpack.c.bf16 %v387_v8, %v386_v7  ;;  %v388_v13 = vld [vmem:[#allocation2 + $0x70] sm:$0xff]  ;;  %v389_v14 = vld [vmem:[#allocation2 + $0x78] sm:$0xff]  ;;  %v438_v17 = vld [vmem:[#allocation2 + $0x2] sm:$0xff] }
  0x89   : > { %2184 = vmatpush3.bf16.msra.mxu0 %v2509_v22  ;;  %v2526_v15 = vld [vmem:[#allocation6 + $0xb0] sm:$0xff]   ;;  %v439_v18 = vld [vmem:[#allocation2 + $0xa] sm:$0xff]  ;;  %v1934_v19 = vpack.c.bf16 %v389_v14, %v388_v13  ;;  %v2527_v22 = vld [vmem:[#allocation6 + $0xb8] sm:$0xff]  }
  0x8a   : > { %2185 = vmatprep.subr.bf16.mxu0 %v2510_v27  ;;  %v1946_v21 = vpack.c.bf16 %v439_v18, %v438_v17  ;;  %vm3014_vm4 = vmpackc.low %vm2076_vm3, %vm2718_vm1  ;;  %v440_v24 = vld [vmem:[#allocation2 + $0x12] sm:$0xff]  ;;  %v441_v25 = vld [vmem:[#allocation2 + $0x1a] sm:$0xff] }
  0x8b   : > { %v442_v2 = vld [vmem:[#allocation2 + $0x22] sm:$0xff]  ;;  %v443_v26 = vld [vmem:[#allocation2 + $0x2a] sm:$0xff]  ;;  %v3039_v51 = vld [vmem:[%s3237_s2] ss:$0 sm:$0xff] }
  0x8c   : > { %v450_v37 = vld [vmem:[#allocation2 + $0x62] sm:$0xff]  ;;  %v451_v38 = vld [vmem:[#allocation2 + $0x6a] sm:$0xff] }
  0x8d   : > { %2186 = vmatpush3.bf16.msra.mxu0 %v2510_v27  ;;  %v1950_v27 = vpack.c.bf16 %v441_v25, %v440_v24  ;;  %v1970_v40 = vpack.c.bf16 %v451_v38, %v450_v37  ;;  %v2532_v46 = vld [vmem:[#allocation8 + $0x60] sm:$0xff]   ;;  %v2533_v47 = vld [vmem:[#allocation8 + $0x68] sm:$0xff]  }
  0x8e   : > { %2187 = vmatprep.subr.bf16.mxu0 %v2511_v28  ;;  %v2537_v18 = vld [vmem:[#allocation8 + $0x8] sm:$0xff]  }
  0x91   : > { %2188 = vmatpush3.bf16.msra.mxu0 %v2511_v28  ;;  %v1954_v28 = vpack.c.bf16 %v443_v26, %v442_v2 }
  0x92   : > { %2205 = vmatprep.subr.bf16.mxu0 %v2512_v29 }
  0x94   : > { %2190 = vmatmul.mubr.bf16.vlgmr.msra.gmra.mrb[0].mxu0 %v431_v30  ;;  %v445_v30 = vld [vmem:[#allocation2 + $0x3a] sm:$0xff] }
  0x95   : > { %2206 = vmatpush3.bf16.msra.mxu0 %v2512_v29  ;;  %2193 = vmatprep.mubr.bf16.mxu0 %v432_v31  ;;  %v444_v29 = vld [vmem:[#allocation2 + $0x32] sm:$0xff]  ;;  %v446_v31 = vld [vmem:[#allocation2 + $0x42] sm:$0xff] }
  0x96   : > { %2207 = vmatprep.subr.bf16.mxu0 %v2513_v32 }
  0x99   : > { %2208 = vmatpush3.bf16.msra.mxu0 %v2513_v32  ;;  %v447_v32 = vld [vmem:[#allocation2 + $0x4a] sm:$0xff] }
  0x9a   : > { %2209 = vmatprep.subr.bf16.mxu0 %v2514_v33 }
  0x9c   : > { %2194 = vmatmul.mubr.bf16.gmra.mrb[4].mxu0 %v433_v34  ;;  %v1962_v34 = vpack.c.bf16 %v447_v32, %v446_v31 }
  0x9d   : > { %2210 = vmatpush3.bf16.msra.mxu0 %v2514_v33  ;;  %2197 = vmatprep.mubr.bf16.mxu0 %v434_v35  ;;  %v1958_v33 = vpack.c.bf16 %v445_v30, %v444_v29  ;;  %v448_v35 = vld [vmem:[#allocation2 + $0x52] sm:$0xff] }
  0x9e   : > { %2211 = vmatprep.subr.bf16.mxu0 %v2515_v36 }
  0xa1   : > { %2212 = vmatpush3.bf16.msra.mxu0 %v2515_v36  ;;  %v449_v36 = vld [vmem:[#allocation2 + $0x5a] sm:$0xff] }
  0xa2   : > { %2213 = vmatprep.subr.bf16.mxu0 %v2516_v39 }
  0xa4   : > { %2198 = vmatmul.mubr.bf16.gmra.mrb[8].mxu0 %v435_v41  ;;  %v452_v41 = vld [vmem:[#allocation2 + $0x72] sm:$0xff] }
  0xa5   : > { %2214 = vmatpush3.bf16.msra.mxu0 %v2516_v39  ;;  %2201 = vmatprep.mubr.bf16.mxu0 %v436_v43  ;;  %v1966_v39 = vpack.c.bf16 %v449_v36, %v448_v35 }
  0xa6   : > { %2215 = vmatprep.subr.bf16.mxu0 %v2517_v42 }
  0xa9   : > { %2216 = vmatpush3.bf16.msra.mxu0 %v2517_v42  ;;  %v453_v42 = vld [vmem:[#allocation2 + $0x7a] sm:$0xff] }
  0xaa   : > { %2217 = vmatprep.subr.bf16.mxu0 %v2518_v45  ;;  %v1974_v43 = vpack.c.bf16 %v453_v42, %v452_v41 }
  0xac   : > { %2202 = vmatmul.mubr.bf16.gmra.mrb[12].mxu0 %v437_v48  ;;  %v2534_v48 = vld [vmem:[#allocation8 + $0x70] sm:$0xff]  }
  0xad   : > { %2218 = vmatpush3.bf16.msra.mxu0 %v2518_v45  ;;  %2221 = vmatprep.mubr.msk.bf16.mxu0 %vm2993_vm2, %v1906_v50  ;;  %v2531_v45 = vld [vmem:[#allocation8 + $0x58] sm:$0xff]   ;;  %v2536_v50 = vld [vmem:[#allocation8] sm:$0xff]  }
  0xae   : > { %2219 = vmatprep.subr.bf16.mxu0 %v2519_v49  ;;  %2275 = vmatprep.subr.bf16.mxu1 %v2531_v45 }
  0xaf   : > { %2276 = vmatpush3.bf16.msra.mxu1 %v2531_v45 }
  0xb0   : > { %2277 = vmatprep.subr.bf16.mxu1 %v2532_v46 }
  0xb1   : > { %2220 = vmatpush3.bf16.msra.mxu0 %v2519_v49  ;;  %v2535_v49 = vld [vmem:[#allocation8 + $0x78] sm:$0xff]  }
  0xb2   : > { %2237 = vmatprep.subr.bf16.mxu0 %v2520_v53 }
  0xb3   : > { %2278 = vmatpush3.bf16.msra.mxu1 %v2532_v46 }
  0xb4   : > { %2222 = vmatmul.mubr.msk.bf16.vlgmr.msra.gmra.mrb[0].mxu0 %vm2993_vm2, %v1910_v56  ;;  %2279 = vmatprep.subr.bf16.mxu1 %v2533_v47 }
  0xb5   : > { %2238 = vmatpush3.bf16.msra.mxu0 %v2520_v53  ;;  %2225 = vmatprep.mubr.msk.bf16.mxu0 %vm2993_vm2, %v1914_v57  ;;  %v3044_v53 = vld [vmem:[%s3238_s3] ss:$0 sm:$0xff] }
  0xb6   : > { %2239 = vmatprep.subr.bf16.mxu0 %v2521_v58 }
  0xb7   : > { %2280 = vmatpush3.bf16.msra.mxu1 %v2533_v47 }
  0xb8   : > { %2281 = vmatprep.subr.bf16.mxu1 %v2534_v48 }
  0xb9   : > { %2240 = vmatpush3.bf16.msra.mxu0 %v2521_v58 }
  0xba   : > { %2241 = vmatprep.subr.bf16.mxu0 %v2522_v61 }
  0xbb   : > { %2282 = vmatpush3.bf16.msra.mxu1 %v2534_v48  ;;  %v2540_v48 = vld [vmem:[#allocation8 + $0x20] sm:$0xff]  }
  0xbc   : > { %2226 = vmatmul.mubr.msk.bf16.gmra.mrb[4].mxu0 %vm2993_vm2, %v1918_v0  ;;  %2283 = vmatprep.subr.bf16.mxu1 %v2535_v49 }
  0xbd   : > { %2242 = vmatpush3.bf16.msra.mxu0 %v2522_v61  ;;  %2229 = vmatprep.mubr.msk.bf16.mxu0 %vm2993_vm2, %v1922_v1 }
  0xbe   : > { %2243 = vmatprep.subr.bf16.mxu0 %v2523_v3 }
  0xbf   : > { %2284 = vmatpush3.bf16.msra.mxu1 %v2535_v49 }
  0xc0   : > { %2301 = vmatprep.subr.bf16.mxu1 %v2536_v50 }
  0xc1   : > { %2244 = vmatpush3.bf16.msra.mxu0 %v2523_v3 }
  0xc2   : > { %2245 = vmatprep.subr.bf16.mxu0 %v2524_v6 }
  0xc4   : > { %2230 = vmatmul.mubr.msk.bf16.gmra.mrb[8].mxu0 %vm2993_vm2, %v1926_v9 }
  0xc5   : > { %2246 = vmatpush3.bf16.msra.mxu0 %v2524_v6  ;;  %2233 = vmatprep.mubr.msk.bf16.mxu0 %vm2993_vm2, %v1930_v11 }
  0xc6   : > { %2247 = vmatprep.subr.bf16.mxu0 %v2525_v12 }
  0xc9   : > { %2248 = vmatpush3.bf16.msra.mxu0 %v2525_v12 }
  0xca   : > { %2249 = vmatprep.subr.bf16.mxu0 %v2526_v15 }
  0xcc   : > { %2234 = vmatmul.mubr.msk.bf16.gmra.mrb[12].mxu0 %vm2993_vm2, %v1934_v19 }
  0xcd   : > { %2250 = vmatpush3.bf16.msra.mxu0 %v2526_v15  ;;  %2253 = vmatprep.mubr.msk.bf16.mxu0 %vm3014_vm4, %v1946_v21 }
  0xce   : > { %2251 = vmatprep.subr.bf16.mxu0 %v2527_v22 }
  0xd1   : > { %2252 = vmatpush3.bf16.msra.mxu0 %v2527_v22 }
  0xd4   : > { %2254 = vmatmul.mubr.msk.bf16.vlgmr.msra.gmra.mrb[0].mxu0 %vm3014_vm4, %v1950_v27  ;;  %v2538_v27 = vld [vmem:[#allocation8 + $0x10] sm:$0xff]  }
  0xd5   : > { %2257 = vmatprep.mubr.msk.bf16.mxu0 %vm3014_vm4, %v1954_v28 }
  0xdc   : > { %2258 = vmatmul.mubr.msk.bf16.gmra.mrb[4].mxu0 %vm3014_vm4, %v1958_v33 }
  0xdd   : > { %2261 = vmatprep.mubr.msk.bf16.mxu0 %vm3014_vm4, %v1962_v34 }
  0xe4   : > { %2262 = vmatmul.mubr.msk.bf16.gmra.mrb[8].mxu0 %vm3014_vm4, %v1966_v39  ;;  %v2539_v39 = vld [vmem:[#allocation8 + $0x18] sm:$0xff]  }
  0xe5   : > { %2265 = vmatprep.mubr.msk.bf16.mxu0 %vm3014_vm4, %v1970_v40 }
  0xec   : > { %2266 = vmatmul.mubr.msk.bf16.gmra.mrb[12].mxu0 %vm3014_vm4, %v1974_v43 }
 0x1a7   : > { %v2255_v52 = vpop.f32.mrb[0].mxu0 }
 0x1a8   : > { %v986_v54 = vmul.f32 %v2255_v52, %v3039_v51  ;;  %v898_v55 = vpop.f32.mrb[1].mxu0 }
 0x1a9   : > { %v984_v56 = vmul.f32 %v3039_v51, %v898_v55  ;;  %v2256_v57 = vpop.f32.mrb[2].mxu0 }
 0x1aa   : > { %v1009_v58 = vadd.f32 %v3044_v53, %v986_v54  ;;  %v987_v59 = vmul.f32 %v2256_v57, %v3039_v51  ;;  %v901_v60 = vpop.f32.mrb[3].mxu0 }
 0x1ab   : > { %v1007_v61 = vadd.f32 %v3044_v53, %v984_v56  ;;  %v985_v62 = vmul.f32 %v3039_v51, %v901_v60 }
 0x1ac   : > { %v1025_v63 = vmax.f32 %v1009_v58, 0.0  ;;  %v1010_v0 = vadd.f32 %v3044_v53, %v987_v59 }
 0x1ad   : > { %v1023_v1 = vmax.f32 %v1007_v61, 0.0  ;;  %v1008_v3 = vadd.f32 %v3044_v53, %v985_v62  ;;  %v2541_v62 = vld [vmem:[#allocation8 + $0x28] sm:$0xff]  }
 0x1ae   : > { %1041 = vst [vmem:[#allocation2 + $0x11] sm:$0xff] %v1025_v63  ;;  %v1026_v4 = vmax.f32 %v1010_v0, 0.0 }
 0x1af   : > { %1039 = vst [vmem:[#allocation2 + $0x1] sm:$0xff] %v1023_v1  ;;  %v1024_v5 = vmax.f32 %v1008_v3, 0.0  ;;  %v2259_v6 = vpop.f32.mrb[4].mxu0 }
 0x1b0   : > { %1042 = vst [vmem:[#allocation2 + $0x19] sm:$0xff] %v1026_v4  ;;  %v990_v7 = vmul.f32 %v2259_v6, %v3039_v51  ;;  %v914_v8 = vpop.f32.mrb[5].mxu0  ;;  %v1112_v9 = vpack.c.bf16 %v1026_v4, %v1025_v63 }
 0x1b1   : > { %1040 = vst [vmem:[#allocation2 + $0x9] sm:$0xff] %v1024_v5  ;;  %v988_v11 = vmul.f32 %v3039_v51, %v914_v8  ;;  %v2260_v12 = vpop.f32.mrb[6].mxu0  ;;  %v1111_v13 = vpack.c.bf16 %v1024_v5, %v1023_v1 }
 0x1b2   : > { %v1013_v14 = vadd.f32 %v3044_v53, %v990_v7  ;;  %v991_v15 = vmul.f32 %v2260_v12, %v3039_v51  ;;  %v917_v17 = vpop.f32.mrb[7].mxu0  ;;  %v2542_v7 = vld [vmem:[#allocation8 + $0x30] sm:$0xff]  }
 0x1b3   : > { %v1011_v19 = vadd.f32 %v3044_v53, %v988_v11  ;;  %v989_v21 = vmul.f32 %v3039_v51, %v917_v17  ;;  %2285 = vmatprep.mubr.bf16.mxu1 %v1111_v13  ;;  %v2543_v13 = vld [vmem:[#allocation8 + $0x38] sm:$0xff]  }
 0x1b4   : > { %v1029_v22 = vmax.f32 %v1013_v14, 0.0  ;;  %v1014_v24 = vadd.f32 %v3044_v53, %v991_v15  ;;  %2286 = vmatmul.mubr.bf16.vlgmr.msra.gmra.mrb[0].mxu1 %v1112_v9 }
 0x1b5   : > { %v1027_v25 = vmax.f32 %v1011_v19, 0.0  ;;  %v1012_v2 = vadd.f32 %v3044_v53, %v989_v21  ;;  %2302 = vmatpush3.bf16.msra.mxu1 %v2536_v50 }
 0x1b6   : > { %1045 = vst [vmem:[#allocation2 + $0x31] sm:$0xff] %v1029_v22  ;;  %v1030_v26 = vmax.f32 %v1014_v24, 0.0  ;;  %2303 = vmatprep.subr.bf16.mxu1 %v2537_v18  ;;  %v1055_v12 = vld [vmem:[#allocation2] sm:$0xff] }
 0x1b7   : > { %1043 = vst [vmem:[#allocation2 + $0x21] sm:$0xff] %v1027_v25  ;;  %v1028_v28 = vmax.f32 %v1012_v2, 0.0  ;;  %v2263_v29 = vpop.f32.mrb[8].mxu0  ;;  %v1058_v17 = vld [vmem:[#allocation2 + $0x18] sm:$0xff] }
 0x1b8   : > { %1046 = vst [vmem:[#allocation2 + $0x39] sm:$0xff] %v1030_v26  ;;  %v994_v30 = vmul.f32 %v2263_v29, %v3039_v51  ;;  %v930_v31 = vpop.f32.mrb[9].mxu0  ;;  %v1114_v32 = vpack.c.bf16 %v1030_v26, %v1029_v22  ;;  %v1056_v11 = vld [vmem:[#allocation2 + $0x8] sm:$0xff]  ;;  %v1057_v15 = vld [vmem:[#allocation2 + $0x10] sm:$0xff] }
 0x1b9   : > { %1044 = vst [vmem:[#allocation2 + $0x29] sm:$0xff] %v1028_v28  ;;  %v992_v33 = vmul.f32 %v3039_v51, %v930_v31  ;;  %v2264_v34 = vpop.f32.mrb[10].mxu0  ;;  %2304 = vmatpush3.bf16.msra.mxu1 %v2537_v18  ;;  %v1113_v35 = vpack.c.bf16 %v1028_v28, %v1027_v25  ;;  %v1996_v14 = vpack.c.bf16 %v1056_v11, %v1055_v12  ;;  %v2545_v22 = vld [vmem:[#allocation8 + $0x88] sm:$0xff]   ;;  %v2546_v25 = vld [vmem:[#allocation8 + $0x90] sm:$0xff]   ;;  %v3118_v11 = vld [vmem:[%s3241_s6] ss:$0 sm:$0xff] }
 0x1ba   : > { %v1017_v36 = vadd.f32 %v3044_v53, %v994_v30  ;;  %v995_v37 = vmul.f32 %v2264_v34, %v3039_v51  ;;  %v933_v38 = vpop.f32.mrb[11].mxu0  ;;  %2305 = vmatprep.subr.bf16.mxu1 %v2538_v27  ;;  %v2000_v19 = vpack.c.bf16 %v1058_v17, %v1057_v15  ;;  %v2547_v30 = vld [vmem:[#allocation8 + $0x98] sm:$0xff]  }
 0x1bb   : > { %v1015_v40 = vadd.f32 %v3044_v53, %v992_v33  ;;  %v993_v41 = vmul.f32 %v3039_v51, %v933_v38  ;;  %2289 = vmatprep.mubr.bf16.mxu1 %v1113_v35  ;;  %v2549_v38 = vld [vmem:[#allocation8 + $0xa8] sm:$0xff]  }
 0x1bc   : > { %v1033_v42 = vmax.f32 %v1017_v36, 0.0  ;;  %v1018_v43 = vadd.f32 %v3044_v53, %v995_v37  ;;  %2290 = vmatmul.mubr.bf16.gmra.mrb[4].mxu1 %v1114_v32  ;;  %v2548_v32 = vld [vmem:[#allocation8 + $0xa0] sm:$0xff]  }
 0x1bd   : > { %v1031_v45 = vmax.f32 %v1015_v40, 0.0  ;;  %v1016_v46 = vadd.f32 %v3044_v53, %v993_v41  ;;  %2306 = vmatpush3.bf16.msra.mxu1 %v2538_v27  ;;  %v2550_v40 = vld [vmem:[#allocation8 + $0xb0] sm:$0xff]  }
 0x1be   : > { %1049 = vst [vmem:[#allocation2 + $0x51] sm:$0xff] %v1033_v42  ;;  %v1034_v47 = vmax.f32 %v1018_v43, 0.0  ;;  %2307 = vmatprep.subr.bf16.mxu1 %v2539_v39  ;;  %v1059_v21 = vld [vmem:[#allocation2 + $0x20] sm:$0xff] }
 0x1bf   : > { %1047 = vst [vmem:[#allocation2 + $0x41] sm:$0xff] %v1031_v45  ;;  %v1032_v49 = vmax.f32 %v1016_v46, 0.0  ;;  %v2267_v50 = vpop.f32.mrb[12].mxu0  ;;  %v1062_v26 = vld [vmem:[#allocation2 + $0x38] sm:$0xff]  ;;  %v1119_v43 = vld [vmem:[#allocation2 + $0x2] sm:$0xff] }
 0x1c0   : > { %1050 = vst [vmem:[#allocation2 + $0x59] sm:$0xff] %v1034_v47  ;;  %v998_v52 = vmul.f32 %v2267_v50, %v3039_v51  ;;  %v946_v54 = vpop.f32.mrb[13].mxu0  ;;  %v1116_v55 = vpack.c.bf16 %v1034_v47, %v1033_v42  ;;  %v1060_v18 = vld [vmem:[#allocation2 + $0x28] sm:$0xff]  ;;  %v1061_v2 = vld [vmem:[#allocation2 + $0x30] sm:$0xff]  ;;  %v2551_v47 = vld [vmem:[#allocation8 + $0xb8] sm:$0xff]  }
 0x1c1   : > { %1048 = vst [vmem:[#allocation2 + $0x49] sm:$0xff] %v1032_v49  ;;  %v996_v56 = vmul.f32 %v3039_v51, %v946_v54  ;;  %v2268_v57 = vpop.f32.mrb[14].mxu0  ;;  %2308 = vmatpush3.bf16.msra.mxu1 %v2539_v39  ;;  %v1115_v58 = vpack.c.bf16 %v1032_v49, %v1031_v45  ;;  %v2004_v24 = vpack.c.bf16 %v1060_v18, %v1059_v21  ;;  %v1120_v45 = vld [vmem:[#allocation2 + $0xa] sm:$0xff]  ;;  %v1122_v49 = vld [vmem:[#allocation2 + $0x1a] sm:$0xff]  ;;  %v1123_v50 = vld [vmem:[#allocation2 + $0x22] sm:$0xff] }
 0x1c2   : > { %v1021_v59 = vadd.f32 %v3044_v53, %v998_v52  ;;  %v999_v60 = vmul.f32 %v2268_v57, %v3039_v51  ;;  %v949_v61 = vpop.f32.mrb[15].mxu0  ;;  %2309 = vmatprep.subr.bf16.mxu1 %v2540_v48  ;;  %v2008_v28 = vpack.c.bf16 %v1062_v26, %v1061_v2  ;;  %v1124_v52 = vld [vmem:[#allocation2 + $0x2a] sm:$0xff]  ;;  %v1121_v54 = vld [vmem:[#allocation2 + $0x12] sm:$0xff] }
 0x1c3   : > { %v1019_v63 = vadd.f32 %v3044_v53, %v996_v56  ;;  %v997_v0 = vmul.f32 %v3039_v51, %v949_v61  ;;  %2293 = vmatprep.mubr.bf16.mxu1 %v1115_v58  ;;  %v2044_v56 = vpack.c.bf16 %v1124_v52, %v1123_v50 }
 0x1c4   : > { %v1037_v1 = vmax.f32 %v1021_v59, 0.0  ;;  %v1022_v3 = vadd.f32 %v3044_v53, %v999_v60  ;;  %2294 = vmatmul.mubr.bf16.gmra.mrb[8].mxu1 %v1116_v55  ;;  %v2040_v55 = vpack.c.bf16 %v1122_v49, %v1121_v54  ;;  %v1125_v59 = vld [vmem:[#allocation2 + $0x32] sm:$0xff] }
 0x1c5   : > { %v1035_v4 = vmax.f32 %v1019_v63, 0.0  ;;  %v1020_v5 = vadd.f32 %v3044_v53, %v997_v0  ;;  %2310 = vmatpush3.bf16.msra.mxu1 %v2540_v48  ;;  %v2544_v53 = vld [vmem:[#allocation8 + $0x80] sm:$0xff]   ;;  %v2036_v48 = vpack.c.bf16 %v1120_v45, %v1119_v43 }
 0x1c6   : > { %1053 = vst [vmem:[#allocation2 + $0x71] sm:$0xff] %v1037_v1  ;;  %v1038_v6 = vmax.f32 %v1022_v3, 0.0  ;;  %2311 = vmatprep.subr.bf16.mxu1 %v2541_v62  ;;  %v1063_v29 = vld [vmem:[#allocation2 + $0x40] sm:$0xff] }
 0x1c7   : > { %1051 = vst [vmem:[#allocation2 + $0x61] sm:$0xff] %v1035_v4  ;;  %v1036_v8 = vmax.f32 %v1020_v5, 0.0  ;;  %v1066_v34 = vld [vmem:[#allocation2 + $0x58] sm:$0xff] }
 0x1c8   : > { %1054 = vst [vmem:[#allocation2 + $0x79] sm:$0xff] %v1038_v6  ;;  %v1118_v9 = vpack.c.bf16 %v1038_v6, %v1037_v1  ;;  %v1064_v27 = vld [vmem:[#allocation2 + $0x48] sm:$0xff]  ;;  %v1065_v33 = vld [vmem:[#allocation2 + $0x50] sm:$0xff]  ;;  %v1126_v44 = vld [vmem:[#allocation2 + $0x3a] sm:$0xff] }
 0x1c9   : > { %1052 = vst [vmem:[#allocation2 + $0x69] sm:$0xff] %v1036_v8  ;;  %2312 = vmatpush3.bf16.msra.mxu1 %v2541_v62  ;;  %v1117_v51 = vpack.c.bf16 %v1036_v8, %v1035_v4  ;;  %v2012_v31 = vpack.c.bf16 %v1064_v27, %v1063_v29  ;;  %v2016_v36 = vpack.c.bf16 %v1066_v34, %v1065_v33  ;;  %v1127_v57 = vld [vmem:[#allocation2 + $0x42] sm:$0xff]  ;;  %v1128_v58 = vld [vmem:[#allocation2 + $0x4a] sm:$0xff]  ;;  %v1129_v1 = vld [vmem:[#allocation2 + $0x52] sm:$0xff] }
 0x1ca   : > { %2313 = vmatprep.subr.bf16.mxu1 %v2542_v7  ;;  %v2048_v60 = vpack.c.bf16 %v1126_v44, %v1125_v59  ;;  %v2052_v61 = vpack.c.bf16 %v1128_v58, %v1127_v57  ;;  %v3113_v8 = vld [vmem:[%s3240_s5] ss:$0 sm:$0xff] }
 0x1cb   : > { %2297 = vmatprep.mubr.bf16.mxu1 %v1117_v51 }
 0x1cc   : > { %2298 = vmatmul.mubr.bf16.gmra.mrb[12].mxu1 %v1118_v9 }
 0x1cd   : > { %2314 = vmatpush3.bf16.msra.mxu1 %v2542_v7  ;;  %2317 = vmatprep.mubr.msk.bf16.mxu1 %vm2993_vm2, %v1996_v14 }
 0x1ce   : > { %2315 = vmatprep.subr.bf16.mxu1 %v2543_v13  ;;  %v1067_v37 = vld [vmem:[#allocation2 + $0x60] sm:$0xff] }
 0x1cf   : > { %v1070_v42 = vld [vmem:[#allocation2 + $0x78] sm:$0xff] }
 0x1d0   : > { %v1068_v35 = vld [vmem:[#allocation2 + $0x68] sm:$0xff]  ;;  %v1069_v41 = vld [vmem:[#allocation2 + $0x70] sm:$0xff]  ;;  %v1130_v62 = vld [vmem:[#allocation2 + $0x5a] sm:$0xff] }
 0x1d1   : > { %2316 = vmatpush3.bf16.msra.mxu1 %v2543_v13  ;;  %v2020_v39 = vpack.c.bf16 %v1068_v35, %v1067_v37  ;;  %v2024_v46 = vpack.c.bf16 %v1070_v42, %v1069_v41  ;;  %v1131_v63 = vld [vmem:[#allocation2 + $0x62] sm:$0xff]  ;;  %v1132_v0 = vld [vmem:[#allocation2 + $0x6a] sm:$0xff]  ;;  %v2056_v3 = vpack.c.bf16 %v1130_v62, %v1129_v1  ;;  %v1133_v5 = vld [vmem:[#allocation2 + $0x72] sm:$0xff] }
 0x1d2   : > { %2333 = vmatprep.subr.bf16.mxu1 %v2544_v53  ;;  %v2060_v4 = vpack.c.bf16 %v1132_v0, %v1131_v63  ;;  %v1134_v6 = vld [vmem:[#allocation2 + $0x7a] sm:$0xff]  ;;  %v1712_v62 = vld [vmem:[%s2939_s21 + $0x40] sm:$0xff] }
 0x1d3   : > { %v2064_v7 = vpack.c.bf16 %v1134_v6, %v1133_v5  ;;  %v1711_v42 = vld [vmem:[%s2939_s21 + $0x38] sm:$0xff] }
 0x1d4   : > { %2318 = vmatmul.mubr.msk.bf16.vlgmr.msra.gmra.mrb[0].mxu1 %vm2993_vm2, %v2000_v19  ;;  %v1707_v19 = vld [vmem:[%s2939_s21 + $0x18] sm:$0xff] }
 0x1d5   : > { %2321 = vmatprep.mubr.msk.bf16.mxu1 %vm2993_vm2, %v2004_v24  ;;  %2334 = vmatpush3.bf16.msra.mxu1 %v2544_v53  ;;  %v1704_v53 = vld [vmem:[%s2939_s21] sm:$0xff] }
 0x1d6   : > { %2335 = vmatprep.subr.bf16.mxu1 %v2545_v22 }
 0x1d9   : > { %2336 = vmatpush3.bf16.msra.mxu1 %v2545_v22 }
 0x1da   : > { %2337 = vmatprep.subr.bf16.mxu1 %v2546_v25 }
 0x1dc   : > { %2322 = vmatmul.mubr.msk.bf16.gmra.mrb[4].mxu1 %vm2993_vm2, %v2008_v28 }
 0x1dd   : > { %2325 = vmatprep.mubr.msk.bf16.mxu1 %vm2993_vm2, %v2012_v31  ;;  %2338 = vmatpush3.bf16.msra.mxu1 %v2546_v25  ;;  %v1705_v25 = vld [vmem:[%s2939_s21 + $0x8] sm:$0xff] }
 0x1de   : > { %2339 = vmatprep.subr.bf16.mxu1 %v2547_v30 }
 0x1e1   : > { %2340 = vmatpush3.bf16.msra.mxu1 %v2547_v30 }
 0x1e2   : > { %2341 = vmatprep.subr.bf16.mxu1 %v2548_v32 }
 0x1e4   : > { %2326 = vmatmul.mubr.msk.bf16.gmra.mrb[8].mxu1 %vm2993_vm2, %v2016_v36 }
 0x1e5   : > { %2329 = vmatprep.mubr.msk.bf16.mxu1 %vm2993_vm2, %v2020_v39  ;;  %2342 = vmatpush3.bf16.msra.mxu1 %v2548_v32 }
 0x1e6   : > { %2343 = vmatprep.subr.bf16.mxu1 %v2549_v38 }
 0x1e9   : > { %2344 = vmatpush3.bf16.msra.mxu1 %v2549_v38  ;;  %v1708_v38 = vld [vmem:[%s2939_s21 + $0x20] sm:$0xff] }
 0x1ea   : > { %2345 = vmatprep.subr.bf16.mxu1 %v2550_v40 }
 0x1ec   : > { %2330 = vmatmul.mubr.msk.bf16.gmra.mrb[12].mxu1 %vm2993_vm2, %v2024_v46 }
 0x1ed   : > { %2346 = vmatpush3.bf16.msra.mxu1 %v2550_v40  ;;  %2349 = vmatprep.mubr.msk.bf16.mxu1 %vm3014_vm4, %v2036_v48 }
 0x1ee   : > { %2347 = vmatprep.subr.bf16.mxu1 %v2551_v47 }
 0x1f1   : > { %2348 = vmatpush3.bf16.msra.mxu1 %v2551_v47  ;;  %v1709_v47 = vld [vmem:[%s2939_s21 + $0x28] sm:$0xff] }
 0x1f4   : > { %2350 = vmatmul.mubr.msk.bf16.vlgmr.msra.gmra.mrb[0].mxu1 %vm3014_vm4, %v2040_v55 }
 0x1f5   : > { %2353 = vmatprep.mubr.msk.bf16.mxu1 %vm3014_vm4, %v2044_v56 }
 0x1fc   : > { %2354 = vmatmul.mubr.msk.bf16.gmra.mrb[4].mxu1 %vm3014_vm4, %v2048_v60 }
 0x1fd   : > { %2357 = vmatprep.mubr.msk.bf16.mxu1 %vm3014_vm4, %v2052_v61 }
 0x204   : > { %2358 = vmatmul.mubr.msk.bf16.gmra.mrb[8].mxu1 %vm3014_vm4, %v2056_v3  ;;  %v1715_v3 = vld [vmem:[%s2939_s21 + $0x58] sm:$0xff] }
 0x205   : > { %2361 = vmatprep.mubr.msk.bf16.mxu1 %vm3014_vm4, %v2060_v4 }
 0x20c   : > { %2362 = vmatmul.mubr.msk.bf16.gmra.mrb[12].mxu1 %vm3014_vm4, %v2064_v7  ;;  %v1713_v7 = vld [vmem:[%s2939_s21 + $0x48] sm:$0xff] }
 0x2c7   : > { %v2351_v9 = vpop.f32.mrb[0].mxu1 }
 0x2c8   : > { %v1667_v51 = vmul.f32 %v2351_v9, %v3113_v8  ;;  %v1579_v12 = vpop.f32.mrb[1].mxu1 }
 0x2c9   : > { %v1665_v13 = vmul.f32 %v3113_v8, %v1579_v12  ;;  %v2352_v14 = vpop.f32.mrb[2].mxu1 }
 0x2ca   : > { %v1690_v23 = vadd.f32 %v3118_v11, %v1667_v51  ;;  %v1668_v15 = vmul.f32 %v2352_v14, %v3113_v8  ;;  %v1582_v17 = vpop.f32.mrb[3].mxu1 }
 0x2cb   : > { %v1688_v18 = vadd.f32 %v3118_v11, %v1665_v13  ;;  %v1666_v21 = vmul.f32 %v3113_v8, %v1582_v17 }
 0x2cc   : > { %v1722_v22 = vadd.f32 %v1690_v23, %v2961_v10  ;;  %v1691_v24 = vadd.f32 %v3118_v11, %v1668_v15 }
 0x2cd   : > { %v1720_v2 = vadd.f32 %v1704_v53, %v1688_v18  ;;  %v1689_v26 = vadd.f32 %v3118_v11, %v1666_v21 }
 0x2ce   : > { %v1738_v27 = vmax.f32 %v1722_v22, 0.0  ;;  %v1723_v28 = vadd.f32 %v1707_v19, %v1691_v24  ;;  %v1718_v19 = vld [vmem:[%s2939_s21 + $0x70] sm:$0xff] }
 0x2cf   : > { %v1736_v29 = vmax.f32 %v1720_v2, 0.0  ;;  %v1721_v30 = vadd.f32 %v1705_v25, %v1689_v26  ;;  %v2355_v31 = vpop.f32.mrb[4].mxu1  ;;  %v1716_v25 = vld [vmem:[%s2939_s21 + $0x60] sm:$0xff] }
 0x2d0   : > { %1754 = vst [vmem:[%s2954_s9 + $0x10] sm:$0xff] %v1738_v27  ;;  %v1739_v32 = vmax.f32 %v1723_v28, 0.0  ;;  %v1671_v33 = vmul.f32 %v2355_v31, %v3113_v8  ;;  %v1595_v10 = vpop.f32.mrb[5].mxu1  ;;  %v1719_v28 = vld [vmem:[%s2939_s21 + $0x78] sm:$0xff] }
 0x2d1   : > { %1752 = vst [vmem:[%s2954_s9] sm:$0xff] %v1736_v29  ;;  %v1737_v34 = vmax.f32 %v1721_v30, 0.0  ;;  %v1669_v35 = vmul.f32 %v3113_v8, %v1595_v10  ;;  %v2356_v36 = vpop.f32.mrb[6].mxu1 }
 0x2d2   : > { %1755 = vst [vmem:[%s2954_s9 + $0x18] sm:$0xff] %v1739_v32  ;;  %v1694_v37 = vadd.f32 %v3118_v11, %v1671_v33  ;;  %v1672_v39 = vmul.f32 %v2356_v36, %v3113_v8  ;;  %v1598_v40 = vpop.f32.mrb[7].mxu1  ;;  %v1717_v32 = vld [vmem:[%s2939_s21 + $0x68] sm:$0xff]  ;;  %s2638_s21 = scalar_lea.vmem %s3188_s29, 2048 }
 0x2d3   : > { %1753 = vst [vmem:[%s2954_s9 + $0x8] sm:$0xff] %v1737_v34  ;;  %v1692_v41 = vadd.f32 %v3118_v11, %v1669_v35  ;;  %v1670_v43 = vmul.f32 %v3113_v8, %v1598_v40  ;;  %p2639_p3 = scmp.ne.s32.totalorder %s3188_s29, %s2638_s21  ;;  %p2646_p13 = scmp.lt.s32.totalorder %s2644_s10, %s2638_s21 }
 0x2d4   : > { %v1726_v45 = vadd.f32 %v1694_v37, %v2968_v16  ;;  %v1695_v46 = vadd.f32 %v3118_v11, %v1672_v39 }
 0x2d5   : > { %v1724_v48 = vadd.f32 %v1708_v38, %v1692_v41  ;;  %v1693_v49 = vadd.f32 %v3118_v11, %v1670_v43  ;;  %p2640_p11 = pnand %p2639_p3, %p3261_p1  ;;  %p2647_p2 = por %p2646_p13, %p2645_p10 }
 0x2d6   : > { %v1742_v50 = vmax.f32 %v1726_v45, 0.0  ;;  %v1727_v52 = vadd.f32 %v1711_v42, %v1695_v46 }
 0x2d7   : > { %v1740_v54 = vmax.f32 %v1724_v48, 0.0  ;;  %v1725_v55 = vadd.f32 %v1709_v47, %v1693_v49  ;;  %v2359_v56 = vpop.f32.mrb[8].mxu1  ;;  %p2641_p7 = pneg %p2640_p11 }
 0x2d8   : > { %1758 = vst [vmem:[%s2954_s9 + $0x30] sm:$0xff] %v1742_v50  ;;  %v1743_v44 = vmax.f32 %v1727_v52, 0.0  ;;  %v1675_v57 = vmul.f32 %v2359_v56, %v3113_v8  ;;  %v1611_v16 = vpop.f32.mrb[9].mxu1 }
 0x2d9   : > { %1756 = vst [vmem:[%s2954_s9 + $0x20] sm:$0xff] %v1740_v54  ;;  %v1741_v58 = vmax.f32 %v1725_v55, 0.0  ;;  %v1673_v59 = vmul.f32 %v3113_v8, %v1611_v16  ;;  %v2360_v60 = vpop.f32.mrb[10].mxu1  ;;  %p2648_p0 = pnand %p2647_p2, %p2641_p7 }
 0x2da   : > { %1759 = vst [vmem:[%s2954_s9 + $0x38] sm:$0xff] %v1743_v44  ;;  %v1698_v61 = vadd.f32 %v3118_v11, %v1675_v57  ;;  %v1676_v63 = vmul.f32 %v2360_v60, %v3113_v8  ;;  %v1614_v0 = vpop.f32.mrb[11].mxu1 }
 0x2db   : > { %1757 = vst [vmem:[%s2954_s9 + $0x28] sm:$0xff] %v1741_v58  ;;  %v1696_v1 = vadd.f32 %v3118_v11, %v1673_v59  ;;  %v1674_v4 = vmul.f32 %v3113_v8, %v1614_v0 }
 0x2dc   : > { %v1730_v5 = vadd.f32 %v1698_v61, %v2975_v20  ;;  %v1699_v6 = vadd.f32 %v3118_v11, %v1676_v63 }
 0x2dd   : > { %v1728_v9 = vadd.f32 %v1712_v62, %v1696_v1  ;;  %v1697_v51 = vadd.f32 %v3118_v11, %v1674_v4 }
 0x2de   : > { %v1746_v12 = vmax.f32 %v1730_v5, 0.0  ;;  %v1731_v13 = vadd.f32 %v1715_v3, %v1699_v6 }
 0x2df   : > { %v1744_v14 = vmax.f32 %v1728_v9, 0.0  ;;  %v1729_v23 = vadd.f32 %v1713_v7, %v1697_v51  ;;  %v2363_v53 = vpop.f32.mrb[12].mxu1 }
 0x2e0   : > { %1762 = vst [vmem:[%s2954_s9 + $0x50] sm:$0xff] %v1746_v12  ;;  %v1747_v15 = vmax.f32 %v1731_v13, 0.0  ;;  %v1679_v20 = vmul.f32 %v2363_v53, %v3113_v8  ;;  %v1627_v17 = vpop.f32.mrb[13].mxu1 }
 0x2e1   : > { %1760 = vst [vmem:[%s2954_s9 + $0x40] sm:$0xff] %v1744_v14  ;;  %v1745_v18 = vmax.f32 %v1729_v23, 0.0  ;;  %v1677_v21 = vmul.f32 %v3113_v8, %v1627_v17  ;;  %v2364_v22 = vpop.f32.mrb[14].mxu1 }
 0x2e2   : > { %1763 = vst [vmem:[%s2954_s9 + $0x58] sm:$0xff] %v1747_v15  ;;  %v1702_v24 = vadd.f32 %v3118_v11, %v1679_v20  ;;  %v1680_v2 = vmul.f32 %v2364_v22, %v3113_v8  ;;  %v1630_v26 = vpop.f32.mrb[15].mxu1 }
 0x2e3   : > { %1761 = vst [vmem:[%s2954_s9 + $0x48] sm:$0xff] %v1745_v18  ;;  %v1700_v27 = vadd.f32 %v3118_v11, %v1677_v21  ;;  %v1678_v29 = vmul.f32 %v3113_v8, %v1630_v26 }
 0x2e4   : > { %v1734_v30 = vadd.f32 %v1718_v19, %v1702_v24  ;;  %v1703_v31 = vadd.f32 %v3118_v11, %v1680_v2 }
 0x2e5   : > { %v1732_v33 = vadd.f32 %v1716_v25, %v1700_v27  ;;  %v1701_v10 = vadd.f32 %v3118_v11, %v1678_v29 }
 0x2e6   : > { %v1750_v34 = vmax.f32 %v1734_v30, 0.0  ;;  %v1735_v35 = vadd.f32 %v1719_v28, %v1703_v31 }
 0x2e7   : > { %v1748_v36 = vmax.f32 %v1732_v33, 0.0  ;;  %v1733_v37 = vadd.f32 %v1717_v32, %v1701_v10 }
 0x2e8   : > { %1766 = vst [vmem:[%s2954_s9 + $0x70] sm:$0xff] %v1750_v34  ;;  %v1751_v8 = vmax.f32 %v1735_v35, 0.0 }
 0x2e9   : > { %1764 = vst [vmem:[%s2954_s9 + $0x60] sm:$0xff] %v1748_v36  ;;  %v1749_v11 = vmax.f32 %v1733_v37, 0.0 }
 0x2ea   : > { %1767 = vst [vmem:[%s2954_s9 + $0x78] sm:$0xff] %v1751_v8 }
 0x2eb   : > { %1765 = vst [vmem:[%s2954_s9 + $0x68] sm:$0xff] %v1749_v11 }
 0x2ec   : > { %2651 = shalt.err (!%p2648_p0)
}
 0x2ed   : > { %s2652_s9 = scalar_lea.hbm %s3186_s20, 2048  ;;  %s2656_s12 = scalar_lea.hbm %s3242_s7, 4096 }
 0x2ee   : > { %p2653_p6 = scmp.ne.s32.totalorder %s3186_s20, %s2652_s9  ;;  %p2657_p5 = scmp.lt.u32.totalorder %s3186_s20, %s3242_s7 }
 0x2ef   : > { %p2658_p9 = scmp.lt.u32.totalorder %s2656_s12, %s2652_s9  ;;  %p2660_p3 = scmp.lt.u32.totalorder %s2652_s9, %s3186_s20 }
 0x2f0   : > { %p2654_p8 = pnand %p2653_p6, %p3261_p1 }
 0x2f1   : > { %p2659_p12 = por %p2658_p9, %p2657_p5 }
 0x2f2   : > { %p2655_p4 = pneg %p2654_p8 }
 0x2f3   : > { %p2661_p11 = por %p2660_p3, %p2659_p12 }
 0x2f5   : > { %p2662_p7 = pnand %p2661_p11, %p2655_p4 }
 0x2f7   : > { %2665 = shalt.err (!%p2662_p7)
}
 0x2f8   : > { %s2720_s30 = smov 128   ;;  %s2721_s21 = smov 8  }
 0x2f9   : > { %2439 = dma.vmem_to_hbm [thread:$0]  (%p3261_p1), %s3188_s29, 2048, %s3186_s20, %s1769_s28, %s2720_s30, %s2720_s30, %s2721_s21  }
 0x2fa PF: > { %s1797_s11 = sand.u32 1, %s2696_s24   ;;  %p3262_p10 = scmp.ne.s32.totalorder %s3247_s8, 0 }
 0x2fb   : > { %p3263_p13 = scmp.ge.s32.totalorder %s2708_s27, 2  ;;  %s1798_s22 = scalar_lea.sflag [#allocation5], %s1797_s11 }
 0x2fd   : > { %p2453_p2 = pnand %p3263_p13, %p3262_p10 }
 0x2ff   : > { %2691 = dma.done.wait (!%p2453_p2), %s1798_s22, 2048  }
 0x300   : > { %2693 = vsyncadd (!%p2453_p2), %s1798_s22, 4294965248  ;;  %p21_p0 = scmp.ge.s32.totalorder %s2873_s13, 4   ;;  %s3264_s24 = smov %s2700_s25 }
 0x301   : > { %s3265_s25 = smov %s2704_s26  ;;  %s3266_s26 = smov %s2889_s17 }
 0x302   : > { %s3267_s27 = smov %s2873_s13  ;;  %23 = sbr.rel (!%p21_p0) target bundleno = 6 (0x6), region = 105 }
 0x309   :  { %1803 = vsyncpa [#allocation4], 1 }
 0x30a   :  { %1805 = vsyncpa [#allocation4 + $0x1], 1 }
 0x30b   :  { %1806 = vsyncpa [#allocation7], 1 }
 0x30c   :  { %1807 = vsyncpa [#allocation5], 1 }
 0x30d   :  { %1809 = vsyncpa [#allocation5 + $0x1], 1 }

</bundles_post_ra>
